<compile_context>
chip_gen: v6e
topology: v6e:2x2x1
jax: 0.10.0
libtpu: 0.0.40
codegen_flags: <defaults>
</compile_context>

<pallas_src>
import functools

import jax
import jax.numpy as jnp
from jax.experimental import pallas as pl
from jax.experimental.pallas import tpu as pltpu


def _layer_norm(x, gamma, beta, eps=1e-5):
    mean = jnp.mean(x, axis=-1, keepdims=True)
    var = jnp.mean((x - mean) ** 2, axis=-1, keepdims=True)
    return (x - mean) * jax.lax.rsqrt(var + eps) * gamma + beta


def encoder_sublayer_kernel(xq_ref, xkv_ref, mask_ref,
                            wq_ref, wk_ref, wv_ref, wo_ref,
                            ln1_g_ref, ln1_b_ref,
                            w1_ref, b1_ref, w2_ref, b2_ref,
                            ln2_g_ref, ln2_b_ref,
                            o_ref, *, num_heads):
    # Query tile of the activations; residual path stays in f32.
    xq_f32 = xq_ref[0].astype(jnp.float32)              # (tq, D)
    xq = xq_f32.astype(jnp.bfloat16)
    xkv = xkv_ref[0].astype(jnp.bfloat16)                # (S, D) full keys/values
    # Additive pad-mask bias, computed once (hoisted out of the head loop).
    mask_bias = mask_ref[0].astype(jnp.float32) * (-1e9)  # (1, S)

    tq, D = xq_f32.shape
    S = xkv.shape[0]
    H = num_heads
    dh = D // H
    scale = 1.0 / (dh ** 0.5)

    # ---- fused full-width projections on the MXU (bf16 in, f32 accumulate) --
    q = jnp.dot(xq, wq_ref[...], preferred_element_type=jnp.float32)    # (tq, D)
    k = jnp.dot(xkv, wk_ref[...], preferred_element_type=jnp.float32)   # (S, D)
    v = jnp.dot(xkv, wv_ref[...], preferred_element_type=jnp.float32)   # (S, D)

    q = (q * scale).astype(jnp.bfloat16)   # fold 1/sqrt(dh) into q once
    k = k.astype(jnp.bfloat16)
    v = v.astype(jnp.bfloat16)

    # ---- per-head attention core (static lane slices; dh-narrow by nature) --
    ctx_heads = []
    for h in range(H):
        lo, hi = h * dh, (h + 1) * dh
        qh = q[:, lo:hi]                                  # (tq, dh)
        kh = k[:, lo:hi]                                  # (S, dh)
        vh = v[:, lo:hi]                                  # (S, dh)
        s = jax.lax.dot_general(qh, kh, (((1,), (1,)), ((), ())),
                                preferred_element_type=jnp.float32)      # (tq, S)
        s = s + mask_bias
        m = jnp.max(s, axis=-1, keepdims=True)
        e = jnp.exp(s - m)
        l = jnp.sum(e, axis=-1, keepdims=True)
        p = (e * pl.reciprocal(l, approx=True)).astype(jnp.bfloat16)
        ctx_heads.append(jnp.dot(p, vh, preferred_element_type=jnp.float32))

    # Concat heads -> single full-width output projection (K = D, not dh).
    ctx = jnp.concatenate(ctx_heads, axis=-1).astype(jnp.bfloat16)        # (tq, D)
    att = jnp.dot(ctx, wo_ref[...], preferred_element_type=jnp.float32)   # (tq, D)

    out1 = _layer_norm(att + xq_f32, ln1_g_ref[...], ln1_b_ref[...])

    # ---- position-wise FFN --------------------------------------------------
    h1 = jnp.dot(out1.astype(jnp.bfloat16), w1_ref[...],
                 preferred_element_type=jnp.float32) + b1_ref[...]
    h1 = jnp.maximum(h1, 0.0)
    ffn = jnp.dot(h1.astype(jnp.bfloat16), w2_ref[...],
                  preferred_element_type=jnp.float32) + b2_ref[...]
    out2 = _layer_norm(ffn + out1, ln2_g_ref[...], ln2_b_ref[...])

    o_ref[0] = out2.astype(o_ref.dtype)


def _pick_q_tile(S):
    for t in (512, 256, 128):
        if S % t == 0:
            return t
    return S  # full sequence as one tile (always a legal block shape)


def _sublayer_call(x, mask, params, num_heads, tq, single_buffer_weights):
    B, S, D = x.shape
    d_ff = params["w1"].shape[1]

    def rep_spec(shape):
        # Grid-invariant (replicated) operand: index_map is constant, and we
        # request single buffering so weights don't burn 2x VMEM.
        kwargs = {}
        if single_buffer_weights:
            kwargs["pipeline_mode"] = pl.Buffered(1)
        return pl.BlockSpec(shape, lambda b, q, _n=len(shape): (0,) * _n, **kwargs)

    kernel = functools.partial(encoder_sublayer_kernel, num_heads=num_heads)
    return pl.pallas_call(
        kernel,
        out_shape=jax.ShapeDtypeStruct((B, S, D), x.dtype),
        grid_spec=pltpu.PrefetchScalarGridSpec(
            num_scalar_prefetch=0,
            grid=(B, S // tq),
            in_specs=[
                pl.BlockSpec((1, tq, D), lambda b, q: (b, q, 0)),   # x: query tile
                pl.BlockSpec((1, S, D), lambda b, q: (b, 0, 0)),    # x: full K/V
                pl.BlockSpec((1, 1, S), lambda b, q: (b, 0, 0)),    # pad mask
                rep_spec((D, D)),                                   # wq
                rep_spec((D, D)),                                   # wk
                rep_spec((D, D)),                                   # wv
                rep_spec((D, D)),                                   # wo
                rep_spec((1, D)), rep_spec((1, D)),                 # ln1 gamma/beta
                rep_spec((D, d_ff)), rep_spec((1, d_ff)),           # ffn linear1 w/b
                rep_spec((d_ff, D)), rep_spec((1, D)),              # ffn linear2 w/b
                rep_spec((1, D)), rep_spec((1, D)),                 # ln2 gamma/beta
            ],
            out_specs=pl.BlockSpec((1, tq, D), lambda b, q: (b, q, 0)),
        ),
        compiler_params=pltpu.CompilerParams(
            dimension_semantics=("parallel", "parallel"),
            vmem_limit_bytes=64 * 1024 * 1024,
        ),
    )(x, x, mask,
      params["wq"], params["wk"], params["wv"], params["wo"],
      params["ln1_g"], params["ln1_b"],
      params["w1"], params["b1"], params["w2"], params["b2"],
      params["ln2_g"], params["ln2_b"])


def encoder_sublayer(x, mask, params, num_heads):
    _, S, _ = x.shape
    tq = _pick_q_tile(S)
    try:
        return _sublayer_call(x, mask, params, num_heads, tq,
                              single_buffer_weights=True)
    except Exception:
        # Fallback if pipeline_mode=pl.Buffered(1) is unsupported: identical
        # math with default (double) buffering of the weight operands.
        return _sublayer_call(x, mask, params, num_heads, tq,
                              single_buffer_weights=False)


def encoder_forward(src, enc_pad_mask, layer_params, num_heads):
    B, S, D = src.shape
    mask = enc_pad_mask.reshape(B, 1, S)   # from (B, 1, 1, S)
    x = src
    for params in layer_params:
        x = encoder_sublayer(x, mask, params, num_heads)
    return x


# ---------------- deterministic parameter init (matches init_weights) ---------
def init_layer_params(key, d_model, d_ff, num_heads):
    ks = jax.random.split(key, 6)

    def xavier(k, fan_in, fan_out):
        bound = (6.0 / (fan_in + fan_out)) ** 0.5
        return jax.random.uniform(k, (fan_in, fan_out), jnp.float32, -bound, bound)

    # Weights stored (in, out) so forward is x @ W.  Matmul weights live in
    # bf16 (MXU-native, halves weight DMA/VMEM); LN params / biases stay f32.
    return dict(
        wq=xavier(ks[0], d_model, d_model).astype(jnp.bfloat16),
        wk=xavier(ks[1], d_model, d_model).astype(jnp.bfloat16),
        wv=xavier(ks[2], d_model, d_model).astype(jnp.bfloat16),
        wo=xavier(ks[3], d_model, d_model).astype(jnp.bfloat16),
        ln1_g=jnp.ones((1, d_model), jnp.float32),
        ln1_b=jnp.zeros((1, d_model), jnp.float32),
        w1=xavier(ks[4], d_model, d_ff).astype(jnp.bfloat16),
        b1=jnp.zeros((1, d_ff), jnp.float32),
        w2=xavier(ks[5], d_ff, d_model).astype(jnp.bfloat16),
        b2=jnp.zeros((1, d_model), jnp.float32),
        ln2_g=jnp.ones((1, d_model), jnp.float32),
        ln2_b=jnp.zeros((1, d_model), jnp.float32),
    )


# ---------------- pure-JAX reference (mirrors the kernel's bf16 matmul policy)
def _mm(a, b):
    return jnp.dot(a.astype(jnp.bfloat16), b.astype(jnp.bfloat16),
                   preferred_element_type=jnp.float32)


def reference_sublayer(x, mask, p, num_heads):
    B, S, D = x.shape
    H = num_heads
    dh = D // H
    q = _mm(x, p["wq"])
    k = _mm(x, p["wk"])
    v = _mm(x, p["wv"])
    qh = q.reshape(B, S, H, dh).transpose(0, 2, 1, 3)
    kh = k.reshape(B, S, H, dh).transpose(0, 2, 1, 3)
    vh = v.reshape(B, S, H, dh).transpose(0, 2, 1, 3)
    s = jnp.einsum("bhqd,bhkd->bhqk", qh.astype(jnp.bfloat16),
                   kh.astype(jnp.bfloat16),
                   preferred_element_type=jnp.float32) / (dh ** 0.5)
    s = s + mask[:, None, :, :] * (-1e9)
    w = jax.nn.softmax(s, axis=-1)
    ctx = jnp.einsum("bhqk,bhkd->bhqd", w.astype(jnp.bfloat16),
                     vh.astype(jnp.bfloat16),
                     preferred_element_type=jnp.float32)
    ctx = ctx.transpose(0, 2, 1, 3).reshape(B, S, D)
    att = _mm(ctx, p["wo"])
    out = _layer_norm(att + x, p["ln1_g"], p["ln1_b"])
    h1 = jax.nn.relu(_mm(out, p["w1"]) + p["b1"])
    out2 = _layer_norm(_mm(h1, p["w2"]) + p["b2"] + out, p["ln2_g"], p["ln2_b"])
    return out2


if __name__ == "__main__":
    B, S, D, H, D_FF, L = 2, 8, 32, 4, 64, 2

    key = jax.random.PRNGKey(0)
    k_x, k_p = jax.random.split(key)
    x = jax.random.normal(k_x, (B, S, D), jnp.float32)

    # enc_pad_mask: (B, 1, 1, S); 1.0 at padded key positions, 0.0 elsewhere.
    pad = jnp.zeros((B, S), jnp.float32).at[1, -2:].set(1.0)
    enc_pad_mask = pad.reshape(B, 1, 1, S)

    layer_keys = jax.random.split(k_p, L)
    layer_params = [init_layer_params(k, D, D_FF, H) for k in layer_keys]

    out = encoder_forward(x, enc_pad_mask, layer_params, H)
    out = jax.block_until_ready(out)

    # Reference check (same bf16-operand / f32-accumulate precision policy).
    ref = x
    m = enc_pad_mask.reshape(B, 1, S)
    for p in layer_params:
        ref = reference_sublayer(ref, m, p, H)

    assert out.shape == (B, S, D)
    max_err = float(jnp.max(jnp.abs(out - ref)))
    assert jnp.allclose(out, ref, atol=2e-2, rtol=2e-2), \
        f"Pallas output mismatch vs reference (max abs err {max_err})"
    print("KERNEL_OK")
</pallas_src>

<mosaic_0001>
module attributes {stable_mosaic.version = 11 : i64} {
  func.func @encoder_sublayer_kernel(%arg0: i32, %arg1: i32, %arg2: memref<1x8x32xf32, #tpu.memory_space<vmem>>, %arg3: memref<1x8x32xf32, #tpu.memory_space<vmem>>, %arg4: memref<1x1x8xf32, #tpu.memory_space<vmem>>, %arg5: memref<32x32xbf16, #tpu.memory_space<vmem>>, %arg6: memref<32x32xbf16, #tpu.memory_space<vmem>>, %arg7: memref<32x32xbf16, #tpu.memory_space<vmem>>, %arg8: memref<32x32xbf16, #tpu.memory_space<vmem>>, %arg9: memref<1x32xf32, #tpu.memory_space<vmem>>, %arg10: memref<1x32xf32, #tpu.memory_space<vmem>>, %arg11: memref<32x64xbf16, #tpu.memory_space<vmem>>, %arg12: memref<1x64xf32, #tpu.memory_space<vmem>>, %arg13: memref<64x32xbf16, #tpu.memory_space<vmem>>, %arg14: memref<1x32xf32, #tpu.memory_space<vmem>>, %arg15: memref<1x32xf32, #tpu.memory_space<vmem>>, %arg16: memref<1x32xf32, #tpu.memory_space<vmem>>, %arg17: memref<1x8x32xf32, #tpu.memory_space<vmem>>) attributes {dimension_semantics = [#tpu.dimension_semantics<parallel>, #tpu.dimension_semantics<parallel>], iteration_bounds = array<i64: 2, 1>, scalar_prefetch = 0 : i64, scratch_operands = 0 : i64, tpu.core_type = #tpu.core_type<tc>, window_params = [{transform_indices = @transform_0, window_bounds = array<i64: 1, 8, 32>}, {transform_indices = @transform_1, window_bounds = array<i64: 1, 8, 32>}, {transform_indices = @transform_2, window_bounds = array<i64: 1, 1, 8>}, {pipeline_mode = #tpu.pipeline_mode<synchronous>, transform_indices = @transform_3, window_bounds = array<i64: 32, 32>}, {pipeline_mode = #tpu.pipeline_mode<synchronous>, transform_indices = @transform_4, window_bounds = array<i64: 32, 32>}, {pipeline_mode = #tpu.pipeline_mode<synchronous>, transform_indices = @transform_5, window_bounds = array<i64: 32, 32>}, {pipeline_mode = #tpu.pipeline_mode<synchronous>, transform_indices = @transform_6, window_bounds = array<i64: 32, 32>}, {pipeline_mode = #tpu.pipeline_mode<synchronous>, transform_indices = @transform_7, window_bounds = array<i64: 1, 32>}, {pipeline_mode = #tpu.pipeline_mode<synchronous>, transform_indices = @transform_8, window_bounds = array<i64: 1, 32>}, {pipeline_mode = #tpu.pipeline_mode<synchronous>, transform_indices = @transform_9, window_bounds = array<i64: 32, 64>}, {pipeline_mode = #tpu.pipeline_mode<synchronous>, transform_indices = @transform_10, window_bounds = array<i64: 1, 64>}, {pipeline_mode = #tpu.pipeline_mode<synchronous>, transform_indices = @transform_11, window_bounds = array<i64: 64, 32>}, {pipeline_mode = #tpu.pipeline_mode<synchronous>, transform_indices = @transform_12, window_bounds = array<i64: 1, 32>}, {pipeline_mode = #tpu.pipeline_mode<synchronous>, transform_indices = @transform_13, window_bounds = array<i64: 1, 32>}, {pipeline_mode = #tpu.pipeline_mode<synchronous>, transform_indices = @transform_14, window_bounds = array<i64: 1, 32>}, {transform_indices = @transform_15, window_bounds = array<i64: 1, 8, 32>}]} {
    %c0 = arith.constant 0 : index
    %c0_0 = arith.constant 0 : index
    %c0_1 = arith.constant 0 : index
    %0 = vector.load %arg2[%c0, %c0_0, %c0_1] : memref<1x8x32xf32, #tpu.memory_space<vmem>>, vector<1x8x32xf32>
    %1 = vector.shape_cast %0 : vector<1x8x32xf32> to vector<8x32xf32>
    %2 = arith.truncf %1 : vector<8x32xf32> to vector<8x32xbf16>
    %c0_2 = arith.constant 0 : index
    %c0_3 = arith.constant 0 : index
    %c0_4 = arith.constant 0 : index
    %3 = vector.load %arg3[%c0_2, %c0_3, %c0_4] : memref<1x8x32xf32, #tpu.memory_space<vmem>>, vector<1x8x32xf32>
    %4 = vector.shape_cast %3 : vector<1x8x32xf32> to vector<8x32xf32>
    %5 = arith.truncf %4 : vector<8x32xf32> to vector<8x32xbf16>
    %c0_5 = arith.constant 0 : index
    %c0_6 = arith.constant 0 : index
    %c0_7 = arith.constant 0 : index
    %6 = vector.load %arg4[%c0_5, %c0_6, %c0_7] : memref<1x1x8xf32, #tpu.memory_space<vmem>>, vector<1x1x8xf32>
    %7 = vector.shape_cast %6 : vector<1x1x8xf32> to vector<1x8xf32>
    %cst = arith.constant -1.000000e+09 : f32
    %8 = vector.broadcast %cst : f32 to vector<1x8xf32>
    %9 = arith.mulf %7, %8 : vector<1x8xf32>
    %c0_8 = arith.constant 0 : index
    %c0_9 = arith.constant 0 : index
    %10 = vector.load %arg5[%c0_8, %c0_9] : memref<32x32xbf16, #tpu.memory_space<vmem>>, vector<32x32xbf16>
    %cst_10 = arith.constant dense<0.000000e+00> : vector<8x32xf32>
    %11 = tpu.matmul %2, %10, %cst_10 {dimension_numbers = #tpu.dot_dimension_numbers<[1], [0], [0], [1], [0, 0, 1, 1], [], []>} : vector<8x32xbf16>, vector<32x32xbf16>, vector<8x32xf32> -> vector<8x32xf32>
    %c0_11 = arith.constant 0 : index
    %c0_12 = arith.constant 0 : index
    %12 = vector.load %arg6[%c0_11, %c0_12] : memref<32x32xbf16, #tpu.memory_space<vmem>>, vector<32x32xbf16>
    %cst_13 = arith.constant dense<0.000000e+00> : vector<8x32xf32>
    %13 = tpu.matmul %5, %12, %cst_13 {dimension_numbers = #tpu.dot_dimension_numbers<[1], [0], [0], [1], [0, 0, 1, 1], [], []>} : vector<8x32xbf16>, vector<32x32xbf16>, vector<8x32xf32> -> vector<8x32xf32>
    %c0_14 = arith.constant 0 : index
    %c0_15 = arith.constant 0 : index
    %14 = vector.load %arg7[%c0_14, %c0_15] : memref<32x32xbf16, #tpu.memory_space<vmem>>, vector<32x32xbf16>
    %cst_16 = arith.constant dense<0.000000e+00> : vector<8x32xf32>
    %15 = tpu.matmul %5, %14, %cst_16 {dimension_numbers = #tpu.dot_dimension_numbers<[1], [0], [0], [1], [0, 0, 1, 1], [], []>} : vector<8x32xbf16>, vector<32x32xbf16>, vector<8x32xf32> -> vector<8x32xf32>
    %cst_17 = arith.constant 0.353553385 : f32
    %16 = vector.broadcast %cst_17 : f32 to vector<8x32xf32>
    %17 = arith.mulf %11, %16 : vector<8x32xf32>
    %18 = arith.truncf %17 : vector<8x32xf32> to vector<8x32xbf16>
    %19 = arith.truncf %13 : vector<8x32xf32> to vector<8x32xbf16>
    %20 = arith.truncf %15 : vector<8x32xf32> to vector<8x32xbf16>
    %21 = vector.extract_strided_slice %18 {offsets = [0, 0], sizes = [8, 8], strides = [1, 1]} : vector<8x32xbf16> to vector<8x8xbf16>
    %22 = vector.extract_strided_slice %19 {offsets = [0, 0], sizes = [8, 8], strides = [1, 1]} : vector<8x32xbf16> to vector<8x8xbf16>
    %23 = vector.extract_strided_slice %20 {offsets = [0, 0], sizes = [8, 8], strides = [1, 1]} : vector<8x32xbf16> to vector<8x8xbf16>
    %cst_18 = arith.constant dense<0.000000e+00> : vector<8x8xf32>
    %24 = tpu.matmul %21, %22, %cst_18 {dimension_numbers = #tpu.dot_dimension_numbers<[1], [1], [0], [0], [0, 0, 1, 0], [], []>} : vector<8x8xbf16>, vector<8x8xbf16>, vector<8x8xf32> -> vector<8x8xf32>
    %25 = vector.broadcast %9 : vector<1x8xf32> to vector<8x8xf32>
    %26 = arith.addf %24, %25 : vector<8x8xf32>
    %cst_19 = arith.constant dense<0xFF800000> : vector<8xf32>
    %27 = vector.multi_reduction <maximumf>, %26, %cst_19 [1] : vector<8x8xf32> to vector<8xf32>
    %28 = vector.shape_cast %27 : vector<8xf32> to vector<8x1xf32>
    %29 = vector.broadcast %28 : vector<8x1xf32> to vector<8x8xf32>
    %30 = arith.subf %26, %29 : vector<8x8xf32>
    %31 = math.exp %30 : vector<8x8xf32>
    %cst_20 = arith.constant dense<0.000000e+00> : vector<8xf32>
    %32 = vector.multi_reduction <add>, %31, %cst_20 [1] : vector<8x8xf32> to vector<8xf32>
    %33 = vector.shape_cast %32 : vector<8xf32> to vector<8x1xf32>
    %34 = tpu.reciprocal %33 {approx = true} : vector<8x1xf32> -> vector<8x1xf32>
    %35 = vector.broadcast %34 : vector<8x1xf32> to vector<8x8xf32>
    %36 = arith.mulf %31, %35 : vector<8x8xf32>
    %37 = arith.truncf %36 : vector<8x8xf32> to vector<8x8xbf16>
    %cst_21 = arith.constant dense<0.000000e+00> : vector<8x8xf32>
    %38 = tpu.matmul %37, %23, %cst_21 {dimension_numbers = #tpu.dot_dimension_numbers<[1], [0], [0], [1], [0, 0, 1, 1], [], []>} : vector<8x8xbf16>, vector<8x8xbf16>, vector<8x8xf32> -> vector<8x8xf32>
    %39 = vector.extract_strided_slice %18 {offsets = [0, 8], sizes = [8, 8], strides = [1, 1]} : vector<8x32xbf16> to vector<8x8xbf16>
    %40 = vector.extract_strided_slice %19 {offsets = [0, 8], sizes = [8, 8], strides = [1, 1]} : vector<8x32xbf16> to vector<8x8xbf16>
    %41 = vector.extract_strided_slice %20 {offsets = [0, 8], sizes = [8, 8], strides = [1, 1]} : vector<8x32xbf16> to vector<8x8xbf16>
    %cst_22 = arith.constant dense<0.000000e+00> : vector<8x8xf32>
    %42 = tpu.matmul %39, %40, %cst_22 {dimension_numbers = #tpu.dot_dimension_numbers<[1], [1], [0], [0], [0, 0, 1, 0], [], []>} : vector<8x8xbf16>, vector<8x8xbf16>, vector<8x8xf32> -> vector<8x8xf32>
    %43 = vector.broadcast %9 : vector<1x8xf32> to vector<8x8xf32>
    %44 = arith.addf %42, %43 : vector<8x8xf32>
    %cst_23 = arith.constant dense<0xFF800000> : vector<8xf32>
    %45 = vector.multi_reduction <maximumf>, %44, %cst_23 [1] : vector<8x8xf32> to vector<8xf32>
    %46 = vector.shape_cast %45 : vector<8xf32> to vector<8x1xf32>
    %47 = vector.broadcast %46 : vector<8x1xf32> to vector<8x8xf32>
    %48 = arith.subf %44, %47 : vector<8x8xf32>
    %49 = math.exp %48 : vector<8x8xf32>
    %cst_24 = arith.constant dense<0.000000e+00> : vector<8xf32>
    %50 = vector.multi_reduction <add>, %49, %cst_24 [1] : vector<8x8xf32> to vector<8xf32>
    %51 = vector.shape_cast %50 : vector<8xf32> to vector<8x1xf32>
    %52 = tpu.reciprocal %51 {approx = true} : vector<8x1xf32> -> vector<8x1xf32>
    %53 = vector.broadcast %52 : vector<8x1xf32> to vector<8x8xf32>
    %54 = arith.mulf %49, %53 : vector<8x8xf32>
    %55 = arith.truncf %54 : vector<8x8xf32> to vector<8x8xbf16>
    %cst_25 = arith.constant dense<0.000000e+00> : vector<8x8xf32>
    %56 = tpu.matmul %55, %41, %cst_25 {dimension_numbers = #tpu.dot_dimension_numbers<[1], [0], [0], [1], [0, 0, 1, 1], [], []>} : vector<8x8xbf16>, vector<8x8xbf16>, vector<8x8xf32> -> vector<8x8xf32>
    %57 = vector.extract_strided_slice %18 {offsets = [0, 16], sizes = [8, 8], strides = [1, 1]} : vector<8x32xbf16> to vector<8x8xbf16>
    %58 = vector.extract_strided_slice %19 {offsets = [0, 16], sizes = [8, 8], strides = [1, 1]} : vector<8x32xbf16> to vector<8x8xbf16>
    %59 = vector.extract_strided_slice %20 {offsets = [0, 16], sizes = [8, 8], strides = [1, 1]} : vector<8x32xbf16> to vector<8x8xbf16>
    %cst_26 = arith.constant dense<0.000000e+00> : vector<8x8xf32>
    %60 = tpu.matmul %57, %58, %cst_26 {dimension_numbers = #tpu.dot_dimension_numbers<[1], [1], [0], [0], [0, 0, 1, 0], [], []>} : vector<8x8xbf16>, vector<8x8xbf16>, vector<8x8xf32> -> vector<8x8xf32>
    %61 = vector.broadcast %9 : vector<1x8xf32> to vector<8x8xf32>
    %62 = arith.addf %60, %61 : vector<8x8xf32>
    %cst_27 = arith.constant dense<0xFF800000> : vector<8xf32>
    %63 = vector.multi_reduction <maximumf>, %62, %cst_27 [1] : vector<8x8xf32> to vector<8xf32>
    %64 = vector.shape_cast %63 : vector<8xf32> to vector<8x1xf32>
    %65 = vector.broadcast %64 : vector<8x1xf32> to vector<8x8xf32>
    %66 = arith.subf %62, %65 : vector<8x8xf32>
    %67 = math.exp %66 : vector<8x8xf32>
    %cst_28 = arith.constant dense<0.000000e+00> : vector<8xf32>
    %68 = vector.multi_reduction <add>, %67, %cst_28 [1] : vector<8x8xf32> to vector<8xf32>
    %69 = vector.shape_cast %68 : vector<8xf32> to vector<8x1xf32>
    %70 = tpu.reciprocal %69 {approx = true} : vector<8x1xf32> -> vector<8x1xf32>
    %71 = vector.broadcast %70 : vector<8x1xf32> to vector<8x8xf32>
    %72 = arith.mulf %67, %71 : vector<8x8xf32>
    %73 = arith.truncf %72 : vector<8x8xf32> to vector<8x8xbf16>
    %cst_29 = arith.constant dense<0.000000e+00> : vector<8x8xf32>
    %74 = tpu.matmul %73, %59, %cst_29 {dimension_numbers = #tpu.dot_dimension_numbers<[1], [0], [0], [1], [0, 0, 1, 1], [], []>} : vector<8x8xbf16>, vector<8x8xbf16>, vector<8x8xf32> -> vector<8x8xf32>
    %75 = vector.extract_strided_slice %18 {offsets = [0, 24], sizes = [8, 8], strides = [1, 1]} : vector<8x32xbf16> to vector<8x8xbf16>
    %76 = vector.extract_strided_slice %19 {offsets = [0, 24], sizes = [8, 8], strides = [1, 1]} : vector<8x32xbf16> to vector<8x8xbf16>
    %77 = vector.extract_strided_slice %20 {offsets = [0, 24], sizes = [8, 8], strides = [1, 1]} : vector<8x32xbf16> to vector<8x8xbf16>
    %cst_30 = arith.constant dense<0.000000e+00> : vector<8x8xf32>
    %78 = tpu.matmul %75, %76, %cst_30 {dimension_numbers = #tpu.dot_dimension_numbers<[1], [1], [0], [0], [0, 0, 1, 0], [], []>} : vector<8x8xbf16>, vector<8x8xbf16>, vector<8x8xf32> -> vector<8x8xf32>
    %79 = vector.broadcast %9 : vector<1x8xf32> to vector<8x8xf32>
    %80 = arith.addf %78, %79 : vector<8x8xf32>
    %cst_31 = arith.constant dense<0xFF800000> : vector<8xf32>
    %81 = vector.multi_reduction <maximumf>, %80, %cst_31 [1] : vector<8x8xf32> to vector<8xf32>
    %82 = vector.shape_cast %81 : vector<8xf32> to vector<8x1xf32>
    %83 = vector.broadcast %82 : vector<8x1xf32> to vector<8x8xf32>
    %84 = arith.subf %80, %83 : vector<8x8xf32>
    %85 = math.exp %84 : vector<8x8xf32>
    %cst_32 = arith.constant dense<0.000000e+00> : vector<8xf32>
    %86 = vector.multi_reduction <add>, %85, %cst_32 [1] : vector<8x8xf32> to vector<8xf32>
    %87 = vector.shape_cast %86 : vector<8xf32> to vector<8x1xf32>
    %88 = tpu.reciprocal %87 {approx = true} : vector<8x1xf32> -> vector<8x1xf32>
    %89 = vector.broadcast %88 : vector<8x1xf32> to vector<8x8xf32>
    %90 = arith.mulf %85, %89 : vector<8x8xf32>
    %91 = arith.truncf %90 : vector<8x8xf32> to vector<8x8xbf16>
    %cst_33 = arith.constant dense<0.000000e+00> : vector<8x8xf32>
    %92 = tpu.matmul %91, %77, %cst_33 {dimension_numbers = #tpu.dot_dimension_numbers<[1], [0], [0], [1], [0, 0, 1, 1], [], []>} : vector<8x8xbf16>, vector<8x8xbf16>, vector<8x8xf32> -> vector<8x8xf32>
    %93 = tpu.concatenate %38, %56, %74, %92 in 1 : vector<8x8xf32>, vector<8x8xf32>, vector<8x8xf32>, vector<8x8xf32> -> vector<8x32xf32>
    %94 = arith.truncf %93 : vector<8x32xf32> to vector<8x32xbf16>
    %c0_34 = arith.constant 0 : index
    %c0_35 = arith.constant 0 : index
    %95 = vector.load %arg8[%c0_34, %c0_35] : memref<32x32xbf16, #tpu.memory_space<vmem>>, vector<32x32xbf16>
    %cst_36 = arith.constant dense<0.000000e+00> : vector<8x32xf32>
    %96 = tpu.matmul %94, %95, %cst_36 {dimension_numbers = #tpu.dot_dimension_numbers<[1], [0], [0], [1], [0, 0, 1, 1], [], []>} : vector<8x32xbf16>, vector<32x32xbf16>, vector<8x32xf32> -> vector<8x32xf32>
    %97 = arith.addf %96, %1 : vector<8x32xf32>
    %c0_37 = arith.constant 0 : index
    %c0_38 = arith.constant 0 : index
    %98 = vector.load %arg9[%c0_37, %c0_38] : memref<1x32xf32, #tpu.memory_space<vmem>>, vector<1x32xf32>
    %c0_39 = arith.constant 0 : index
    %c0_40 = arith.constant 0 : index
    %99 = vector.load %arg10[%c0_39, %c0_40] : memref<1x32xf32, #tpu.memory_space<vmem>>, vector<1x32xf32>
    %cst_41 = arith.constant dense<0.000000e+00> : vector<8xf32>
    %100 = vector.multi_reduction <add>, %97, %cst_41 [1] : vector<8x32xf32> to vector<8xf32>
    %101 = vector.shape_cast %100 : vector<8xf32> to vector<8x1xf32>
    %cst_42 = arith.constant 3.200000e+01 : f32
    %102 = vector.broadcast %cst_42 : f32 to vector<8x1xf32>
    %103 = arith.divf %101, %102 : vector<8x1xf32>
    %104 = vector.broadcast %103 : vector<8x1xf32> to vector<8x32xf32>
    %105 = arith.subf %97, %104 : vector<8x32xf32>
    %106 = arith.mulf %105, %105 : vector<8x32xf32>
    %cst_43 = arith.constant dense<0.000000e+00> : vector<8xf32>
    %107 = vector.multi_reduction <add>, %106, %cst_43 [1] : vector<8x32xf32> to vector<8xf32>
    %108 = vector.shape_cast %107 : vector<8xf32> to vector<8x1xf32>
    %cst_44 = arith.constant 3.200000e+01 : f32
    %109 = vector.broadcast %cst_44 : f32 to vector<8x1xf32>
    %110 = arith.divf %108, %109 : vector<8x1xf32>
    %111 = vector.broadcast %103 : vector<8x1xf32> to vector<8x32xf32>
    %112 = arith.subf %97, %111 : vector<8x32xf32>
    %cst_45 = arith.constant 9.99999974E-6 : f32
    %113 = vector.broadcast %cst_45 : f32 to vector<8x1xf32>
    %114 = arith.addf %110, %113 : vector<8x1xf32>
    %115 = math.rsqrt %114 : vector<8x1xf32>
    %116 = vector.broadcast %115 : vector<8x1xf32> to vector<8x32xf32>
    %117 = arith.mulf %112, %116 : vector<8x32xf32>
    %118 = vector.broadcast %98 : vector<1x32xf32> to vector<8x32xf32>
    %119 = arith.mulf %117, %118 : vector<8x32xf32>
    %120 = vector.broadcast %99 : vector<1x32xf32> to vector<8x32xf32>
    %121 = arith.addf %119, %120 : vector<8x32xf32>
    %122 = arith.truncf %121 : vector<8x32xf32> to vector<8x32xbf16>
    %c0_46 = arith.constant 0 : index
    %c0_47 = arith.constant 0 : index
    %123 = vector.load %arg11[%c0_46, %c0_47] : memref<32x64xbf16, #tpu.memory_space<vmem>>, vector<32x64xbf16>
    %cst_48 = arith.constant dense<0.000000e+00> : vector<8x64xf32>
    %124 = tpu.matmul %122, %123, %cst_48 {dimension_numbers = #tpu.dot_dimension_numbers<[1], [0], [0], [1], [0, 0, 1, 1], [], []>} : vector<8x32xbf16>, vector<32x64xbf16>, vector<8x64xf32> -> vector<8x64xf32>
    %c0_49 = arith.constant 0 : index
    %c0_50 = arith.constant 0 : index
    %125 = vector.load %arg12[%c0_49, %c0_50] : memref<1x64xf32, #tpu.memory_space<vmem>>, vector<1x64xf32>
    %126 = vector.broadcast %125 : vector<1x64xf32> to vector<8x64xf32>
    %127 = arith.addf %124, %126 : vector<8x64xf32>
    %cst_51 = arith.constant 0.000000e+00 : f32
    %128 = vector.broadcast %cst_51 : f32 to vector<8x64xf32>
    %129 = arith.maximumf %127, %128 : vector<8x64xf32>
    %130 = arith.truncf %129 : vector<8x64xf32> to vector<8x64xbf16>
    %c0_52 = arith.constant 0 : index
    %c0_53 = arith.constant 0 : index
    %131 = vector.load %arg13[%c0_52, %c0_53] : memref<64x32xbf16, #tpu.memory_space<vmem>>, vector<64x32xbf16>
    %cst_54 = arith.constant dense<0.000000e+00> : vector<8x32xf32>
    %132 = tpu.matmul %130, %131, %cst_54 {dimension_numbers = #tpu.dot_dimension_numbers<[1], [0], [0], [1], [0, 0, 1, 1], [], []>} : vector<8x64xbf16>, vector<64x32xbf16>, vector<8x32xf32> -> vector<8x32xf32>
    %c0_55 = arith.constant 0 : index
    %c0_56 = arith.constant 0 : index
    %133 = vector.load %arg14[%c0_55, %c0_56] : memref<1x32xf32, #tpu.memory_space<vmem>>, vector<1x32xf32>
    %134 = vector.broadcast %133 : vector<1x32xf32> to vector<8x32xf32>
    %135 = arith.addf %132, %134 : vector<8x32xf32>
    %136 = arith.addf %135, %121 : vector<8x32xf32>
    %c0_57 = arith.constant 0 : index
    %c0_58 = arith.constant 0 : index
    %137 = vector.load %arg15[%c0_57, %c0_58] : memref<1x32xf32, #tpu.memory_space<vmem>>, vector<1x32xf32>
    %c0_59 = arith.constant 0 : index
    %c0_60 = arith.constant 0 : index
    %138 = vector.load %arg16[%c0_59, %c0_60] : memref<1x32xf32, #tpu.memory_space<vmem>>, vector<1x32xf32>
    %cst_61 = arith.constant dense<0.000000e+00> : vector<8xf32>
    %139 = vector.multi_reduction <add>, %136, %cst_61 [1] : vector<8x32xf32> to vector<8xf32>
    %140 = vector.shape_cast %139 : vector<8xf32> to vector<8x1xf32>
    %cst_62 = arith.constant 3.200000e+01 : f32
    %141 = vector.broadcast %cst_62 : f32 to vector<8x1xf32>
    %142 = arith.divf %140, %141 : vector<8x1xf32>
    %143 = vector.broadcast %142 : vector<8x1xf32> to vector<8x32xf32>
    %144 = arith.subf %136, %143 : vector<8x32xf32>
    %145 = arith.mulf %144, %144 : vector<8x32xf32>
    %cst_63 = arith.constant dense<0.000000e+00> : vector<8xf32>
    %146 = vector.multi_reduction <add>, %145, %cst_63 [1] : vector<8x32xf32> to vector<8xf32>
    %147 = vector.shape_cast %146 : vector<8xf32> to vector<8x1xf32>
    %cst_64 = arith.constant 3.200000e+01 : f32
    %148 = vector.broadcast %cst_64 : f32 to vector<8x1xf32>
    %149 = arith.divf %147, %148 : vector<8x1xf32>
    %150 = vector.broadcast %142 : vector<8x1xf32> to vector<8x32xf32>
    %151 = arith.subf %136, %150 : vector<8x32xf32>
    %cst_65 = arith.constant 9.99999974E-6 : f32
    %152 = vector.broadcast %cst_65 : f32 to vector<8x1xf32>
    %153 = arith.addf %149, %152 : vector<8x1xf32>
    %154 = math.rsqrt %153 : vector<8x1xf32>
    %155 = vector.broadcast %154 : vector<8x1xf32> to vector<8x32xf32>
    %156 = arith.mulf %151, %155 : vector<8x32xf32>
    %157 = vector.broadcast %137 : vector<1x32xf32> to vector<8x32xf32>
    %158 = arith.mulf %156, %157 : vector<8x32xf32>
    %159 = vector.broadcast %138 : vector<1x32xf32> to vector<8x32xf32>
    %160 = arith.addf %158, %159 : vector<8x32xf32>
    %c0_66 = arith.constant 0 : index
    %c0_67 = arith.constant 0 : index
    %c0_68 = arith.constant 0 : index
    %161 = vector.load %arg17[%c0_66, %c0_67, %c0_68] : memref<1x8x32xf32, #tpu.memory_space<vmem>>, vector<1x8x32xf32>
    %162 = vector.shape_cast %161 : vector<1x8x32xf32> to vector<8x32xf32>
    %163 = vector.shape_cast %160 : vector<8x32xf32> to vector<1x8x32xf32>
    tpu.vector_store %arg17[%c0_66, %c0_67, %c0_68], %163 {strides = array<i32>} : memref<1x8x32xf32, #tpu.memory_space<vmem>>, vector<1x8x32xf32>,
    return
  }
  func.func @transform_0(%arg0: i32, %arg1: i32) -> (i32, i32, i32) {
    %c0_i32 = arith.constant 0 : i32
    %c0_i32_0 = arith.constant 0 : i32
    return %arg0, %arg1, %c0_i32 : i32, i32, i32
  }
  func.func @transform_1(%arg0: i32, %arg1: i32) -> (i32, i32, i32) {
    %c0_i32 = arith.constant 0 : i32
    %c0_i32_0 = arith.constant 0 : i32
    %c0_i32_1 = arith.constant 0 : i32
    return %arg0, %c0_i32, %c0_i32_0 : i32, i32, i32
  }
  func.func @transform_2(%arg0: i32, %arg1: i32) -> (i32, i32, i32) {
    %c0_i32 = arith.constant 0 : i32
    %c0_i32_0 = arith.constant 0 : i32
    %c0_i32_1 = arith.constant 0 : i32
    return %arg0, %c0_i32, %c0_i32_0 : i32, i32, i32
  }
  func.func @transform_3(%arg0: i32, %arg1: i32) -> (i32, i32) {
    %c0_i32 = arith.constant 0 : i32
    %c0_i32_0 = arith.constant 0 : i32
    %c0_i32_1 = arith.constant 0 : i32
    return %c0_i32, %c0_i32_0 : i32, i32
  }
  func.func @transform_4(%arg0: i32, %arg1: i32) -> (i32, i32) {
    %c0_i32 = arith.constant 0 : i32
    %c0_i32_0 = arith.constant 0 : i32
    %c0_i32_1 = arith.constant 0 : i32
    return %c0_i32, %c0_i32_0 : i32, i32
  }
  func.func @transform_5(%arg0: i32, %arg1: i32) -> (i32, i32) {
    %c0_i32 = arith.constant 0 : i32
    %c0_i32_0 = arith.constant 0 : i32
    %c0_i32_1 = arith.constant 0 : i32
    return %c0_i32, %c0_i32_0 : i32, i32
  }
  func.func @transform_6(%arg0: i32, %arg1: i32) -> (i32, i32) {
    %c0_i32 = arith.constant 0 : i32
    %c0_i32_0 = arith.constant 0 : i32
    %c0_i32_1 = arith.constant 0 : i32
    return %c0_i32, %c0_i32_0 : i32, i32
  }
  func.func @transform_7(%arg0: i32, %arg1: i32) -> (i32, i32) {
    %c0_i32 = arith.constant 0 : i32
    %c0_i32_0 = arith.constant 0 : i32
    %c0_i32_1 = arith.constant 0 : i32
    return %c0_i32, %c0_i32_0 : i32, i32
  }
  func.func @transform_8(%arg0: i32, %arg1: i32) -> (i32, i32) {
    %c0_i32 = arith.constant 0 : i32
    %c0_i32_0 = arith.constant 0 : i32
    %c0_i32_1 = arith.constant 0 : i32
    return %c0_i32, %c0_i32_0 : i32, i32
  }
  func.func @transform_9(%arg0: i32, %arg1: i32) -> (i32, i32) {
    %c0_i32 = arith.constant 0 : i32
    %c0_i32_0 = arith.constant 0 : i32
    %c0_i32_1 = arith.constant 0 : i32
    return %c0_i32, %c0_i32_0 : i32, i32
  }
  func.func @transform_10(%arg0: i32, %arg1: i32) -> (i32, i32) {
    %c0_i32 = arith.constant 0 : i32
    %c0_i32_0 = arith.constant 0 : i32
    %c0_i32_1 = arith.constant 0 : i32
    return %c0_i32, %c0_i32_0 : i32, i32
  }
  func.func @transform_11(%arg0: i32, %arg1: i32) -> (i32, i32) {
    %c0_i32 = arith.constant 0 : i32
    %c0_i32_0 = arith.constant 0 : i32
    %c0_i32_1 = arith.constant 0 : i32
    return %c0_i32, %c0_i32_0 : i32, i32
  }
  func.func @transform_12(%arg0: i32, %arg1: i32) -> (i32, i32) {
    %c0_i32 = arith.constant 0 : i32
    %c0_i32_0 = arith.constant 0 : i32
    %c0_i32_1 = arith.constant 0 : i32
    return %c0_i32, %c0_i32_0 : i32, i32
  }
  func.func @transform_13(%arg0: i32, %arg1: i32) -> (i32, i32) {
    %c0_i32 = arith.constant 0 : i32
    %c0_i32_0 = arith.constant 0 : i32
    %c0_i32_1 = arith.constant 0 : i32
    return %c0_i32, %c0_i32_0 : i32, i32
  }
  func.func @transform_14(%arg0: i32, %arg1: i32) -> (i32, i32) {
    %c0_i32 = arith.constant 0 : i32
    %c0_i32_0 = arith.constant 0 : i32
    %c0_i32_1 = arith.constant 0 : i32
    return %c0_i32, %c0_i32_0 : i32, i32
  }
  func.func @transform_15(%arg0: i32, %arg1: i32) -> (i32, i32, i32) {
    %c0_i32 = arith.constant 0 : i32
    %c0_i32_0 = arith.constant 0 : i32
    return %arg0, %arg1, %c0_i32 : i32, i32, i32
  }
}

module attributes {stable_mosaic.version = 11 : i64} {
  func.func @encoder_sublayer_kernel(%arg0: i32, %arg1: i32, %arg2: memref<1x8x32xf32, #tpu.memory_space<vmem>>, %arg3: memref<1x8x32xf32, #tpu.memory_space<vmem>>, %arg4: memref<1x1x8xf32, #tpu.memory_space<vmem>>, %arg5: memref<32x32xbf16, #tpu.memory_space<vmem>>, %arg6: memref<32x32xbf16, #tpu.memory_space<vmem>>, %arg7: memref<32x32xbf16, #tpu.memory_space<vmem>>, %arg8: memref<32x32xbf16, #tpu.memory_space<vmem>>, %arg9: memref<1x32xf32, #tpu.memory_space<vmem>>, %arg10: memref<1x32xf32, #tpu.memory_space<vmem>>, %arg11: memref<32x64xbf16, #tpu.memory_space<vmem>>, %arg12: memref<1x64xf32, #tpu.memory_space<vmem>>, %arg13: memref<64x32xbf16, #tpu.memory_space<vmem>>, %arg14: memref<1x32xf32, #tpu.memory_space<vmem>>, %arg15: memref<1x32xf32, #tpu.memory_space<vmem>>, %arg16: memref<1x32xf32, #tpu.memory_space<vmem>>, %arg17: memref<1x8x32xf32, #tpu.memory_space<vmem>>) attributes {dimension_semantics = [#tpu.dimension_semantics<parallel>, #tpu.dimension_semantics<parallel>], iteration_bounds = array<i64: 2, 1>, scalar_prefetch = 0 : i64, scratch_operands = 0 : i64, tpu.core_type = #tpu.core_type<tc>, window_params = [{transform_indices = @transform_0, window_bounds = array<i64: 1, 8, 32>}, {transform_indices = @transform_1, window_bounds = array<i64: 1, 8, 32>}, {transform_indices = @transform_2, window_bounds = array<i64: 1, 1, 8>}, {pipeline_mode = #tpu.pipeline_mode<synchronous>, transform_indices = @transform_3, window_bounds = array<i64: 32, 32>}, {pipeline_mode = #tpu.pipeline_mode<synchronous>, transform_indices = @transform_4, window_bounds = array<i64: 32, 32>}, {pipeline_mode = #tpu.pipeline_mode<synchronous>, transform_indices = @transform_5, window_bounds = array<i64: 32, 32>}, {pipeline_mode = #tpu.pipeline_mode<synchronous>, transform_indices = @transform_6, window_bounds = array<i64: 32, 32>}, {pipeline_mode = #tpu.pipeline_mode<synchronous>, transform_indices = @transform_7, window_bounds = array<i64: 1, 32>}, {pipeline_mode = #tpu.pipeline_mode<synchronous>, transform_indices = @transform_8, window_bounds = array<i64: 1, 32>}, {pipeline_mode = #tpu.pipeline_mode<synchronous>, transform_indices = @transform_9, window_bounds = array<i64: 32, 64>}, {pipeline_mode = #tpu.pipeline_mode<synchronous>, transform_indices = @transform_10, window_bounds = array<i64: 1, 64>}, {pipeline_mode = #tpu.pipeline_mode<synchronous>, transform_indices = @transform_11, window_bounds = array<i64: 64, 32>}, {pipeline_mode = #tpu.pipeline_mode<synchronous>, transform_indices = @transform_12, window_bounds = array<i64: 1, 32>}, {pipeline_mode = #tpu.pipeline_mode<synchronous>, transform_indices = @transform_13, window_bounds = array<i64: 1, 32>}, {pipeline_mode = #tpu.pipeline_mode<synchronous>, transform_indices = @transform_14, window_bounds = array<i64: 1, 32>}, {transform_indices = @transform_15, window_bounds = array<i64: 1, 8, 32>}]} {
    %c0 = arith.constant 0 : index
    %c0_0 = arith.constant 0 : index
    %c0_1 = arith.constant 0 : index
    %0 = vector.load %arg2[%c0, %c0_0, %c0_1] : memref<1x8x32xf32, #tpu.memory_space<vmem>>, vector<1x8x32xf32>
    %1 = vector.shape_cast %0 : vector<1x8x32xf32> to vector<8x32xf32>
    %2 = arith.truncf %1 : vector<8x32xf32> to vector<8x32xbf16>
    %c0_2 = arith.constant 0 : index
    %c0_3 = arith.constant 0 : index
    %c0_4 = arith.constant 0 : index
    %3 = vector.load %arg3[%c0_2, %c0_3, %c0_4] : memref<1x8x32xf32, #tpu.memory_space<vmem>>, vector<1x8x32xf32>
    %4 = vector.shape_cast %3 : vector<1x8x32xf32> to vector<8x32xf32>
    %5 = arith.truncf %4 : vector<8x32xf32> to vector<8x32xbf16>
    %c0_5 = arith.constant 0 : index
    %c0_6 = arith.constant 0 : index
    %c0_7 = arith.constant 0 : index
    %6 = vector.load %arg4[%c0_5, %c0_6, %c0_7] : memref<1x1x8xf32, #tpu.memory_space<vmem>>, vector<1x1x8xf32>
    %7 = vector.shape_cast %6 : vector<1x1x8xf32> to vector<1x8xf32>
    %cst = arith.constant -1.000000e+09 : f32
    %8 = vector.broadcast %cst : f32 to vector<1x8xf32>
    %9 = arith.mulf %7, %8 : vector<1x8xf32>
    %c0_8 = arith.constant 0 : index
    %c0_9 = arith.constant 0 : index
    %10 = vector.load %arg5[%c0_8, %c0_9] : memref<32x32xbf16, #tpu.memory_space<vmem>>, vector<32x32xbf16>
    %cst_10 = arith.constant dense<0.000000e+00> : vector<8x32xf32>
    %11 = tpu.matmul %2, %10, %cst_10 {dimension_numbers = #tpu.dot_dimension_numbers<[1], [0], [0], [1], [0, 0, 1, 1], [], []>} : vector<8x32xbf16>, vector<32x32xbf16>, vector<8x32xf32> -> vector<8x32xf32>
    %c0_11 = arith.constant 0 : index
    %c0_12 = arith.constant 0 : index
    %12 = vector.load %arg6[%c0_11, %c0_12] : memref<32x32xbf16, #tpu.memory_space<vmem>>, vector<32x32xbf16>
    %cst_13 = arith.constant dense<0.000000e+00> : vector<8x32xf32>
    %13 = tpu.matmul %5, %12, %cst_13 {dimension_numbers = #tpu.dot_dimension_numbers<[1], [0], [0], [1], [0, 0, 1, 1], [], []>} : vector<8x32xbf16>, vector<32x32xbf16>, vector<8x32xf32> -> vector<8x32xf32>
    %c0_14 = arith.constant 0 : index
    %c0_15 = arith.constant 0 : index
    %14 = vector.load %arg7[%c0_14, %c0_15] : memref<32x32xbf16, #tpu.memory_space<vmem>>, vector<32x32xbf16>
    %cst_16 = arith.constant dense<0.000000e+00> : vector<8x32xf32>
    %15 = tpu.matmul %5, %14, %cst_16 {dimension_numbers = #tpu.dot_dimension_numbers<[1], [0], [0], [1], [0, 0, 1, 1], [], []>} : vector<8x32xbf16>, vector<32x32xbf16>, vector<8x32xf32> -> vector<8x32xf32>
    %cst_17 = arith.constant 0.353553385 : f32
    %16 = vector.broadcast %cst_17 : f32 to vector<8x32xf32>
    %17 = arith.mulf %11, %16 : vector<8x32xf32>
    %18 = arith.truncf %17 : vector<8x32xf32> to vector<8x32xbf16>
    %19 = arith.truncf %13 : vector<8x32xf32> to vector<8x32xbf16>
    %20 = arith.truncf %15 : vector<8x32xf32> to vector<8x32xbf16>
    %21 = vector.extract_strided_slice %18 {offsets = [0, 0], sizes = [8, 8], strides = [1, 1]} : vector<8x32xbf16> to vector<8x8xbf16>
    %22 = vector.extract_strided_slice %19 {offsets = [0, 0], sizes = [8, 8], strides = [1, 1]} : vector<8x32xbf16> to vector<8x8xbf16>
    %23 = vector.extract_strided_slice %20 {offsets = [0, 0], sizes = [8, 8], strides = [1, 1]} : vector<8x32xbf16> to vector<8x8xbf16>
    %cst_18 = arith.constant dense<0.000000e+00> : vector<8x8xf32>
    %24 = tpu.matmul %21, %22, %cst_18 {dimension_numbers = #tpu.dot_dimension_numbers<[1], [1], [0], [0], [0, 0, 1, 0], [], []>} : vector<8x8xbf16>, vector<8x8xbf16>, vector<8x8xf32> -> vector<8x8xf32>
    %25 = vector.broadcast %9 : vector<1x8xf32> to vector<8x8xf32>
    %26 = arith.addf %24, %25 : vector<8x8xf32>
    %cst_19 = arith.constant dense<0xFF800000> : vector<8xf32>
    %27 = vector.multi_reduction <maximumf>, %26, %cst_19 [1] : vector<8x8xf32> to vector<8xf32>
    %28 = vector.shape_cast %27 : vector<8xf32> to vector<8x1xf32>
    %29 = vector.broadcast %28 : vector<8x1xf32> to vector<8x8xf32>
    %30 = arith.subf %26, %29 : vector<8x8xf32>
    %31 = math.exp %30 : vector<8x8xf32>
    %cst_20 = arith.constant dense<0.000000e+00> : vector<8xf32>
    %32 = vector.multi_reduction <add>, %31, %cst_20 [1] : vector<8x8xf32> to vector<8xf32>
    %33 = vector.shape_cast %32 : vector<8xf32> to vector<8x1xf32>
    %34 = tpu.reciprocal %33 {approx = true} : vector<8x1xf32> -> vector<8x1xf32>
    %35 = vector.broadcast %34 : vector<8x1xf32> to vector<8x8xf32>
    %36 = arith.mulf %31, %35 : vector<8x8xf32>
    %37 = arith.truncf %36 : vector<8x8xf32> to vector<8x8xbf16>
    %cst_21 = arith.constant dense<0.000000e+00> : vector<8x8xf32>
    %38 = tpu.matmul %37, %23, %cst_21 {dimension_numbers = #tpu.dot_dimension_numbers<[1], [0], [0], [1], [0, 0, 1, 1], [], []>} : vector<8x8xbf16>, vector<8x8xbf16>, vector<8x8xf32> -> vector<8x8xf32>
    %39 = vector.extract_strided_slice %18 {offsets = [0, 8], sizes = [8, 8], strides = [1, 1]} : vector<8x32xbf16> to vector<8x8xbf16>
    %40 = vector.extract_strided_slice %19 {offsets = [0, 8], sizes = [8, 8], strides = [1, 1]} : vector<8x32xbf16> to vector<8x8xbf16>
    %41 = vector.extract_strided_slice %20 {offsets = [0, 8], sizes = [8, 8], strides = [1, 1]} : vector<8x32xbf16> to vector<8x8xbf16>
    %cst_22 = arith.constant dense<0.000000e+00> : vector<8x8xf32>
    %42 = tpu.matmul %39, %40, %cst_22 {dimension_numbers = #tpu.dot_dimension_numbers<[1], [1], [0], [0], [0, 0, 1, 0], [], []>} : vector<8x8xbf16>, vector<8x8xbf16>, vector<8x8xf32> -> vector<8x8xf32>
    %43 = vector.broadcast %9 : vector<1x8xf32> to vector<8x8xf32>
    %44 = arith.addf %42, %43 : vector<8x8xf32>
    %cst_23 = arith.constant dense<0xFF800000> : vector<8xf32>
    %45 = vector.multi_reduction <maximumf>, %44, %cst_23 [1] : vector<8x8xf32> to vector<8xf32>
    %46 = vector.shape_cast %45 : vector<8xf32> to vector<8x1xf32>
    %47 = vector.broadcast %46 : vector<8x1xf32> to vector<8x8xf32>
    %48 = arith.subf %44, %47 : vector<8x8xf32>
    %49 = math.exp %48 : vector<8x8xf32>
    %cst_24 = arith.constant dense<0.000000e+00> : vector<8xf32>
    %50 = vector.multi_reduction <add>, %49, %cst_24 [1] : vector<8x8xf32> to vector<8xf32>
    %51 = vector.shape_cast %50 : vector<8xf32> to vector<8x1xf32>
    %52 = tpu.reciprocal %51 {approx = true} : vector<8x1xf32> -> vector<8x1xf32>
    %53 = vector.broadcast %52 : vector<8x1xf32> to vector<8x8xf32>
    %54 = arith.mulf %49, %53 : vector<8x8xf32>
    %55 = arith.truncf %54 : vector<8x8xf32> to vector<8x8xbf16>
    %cst_25 = arith.constant dense<0.000000e+00> : vector<8x8xf32>
    %56 = tpu.matmul %55, %41, %cst_25 {dimension_numbers = #tpu.dot_dimension_numbers<[1], [0], [0], [1], [0, 0, 1, 1], [], []>} : vector<8x8xbf16>, vector<8x8xbf16>, vector<8x8xf32> -> vector<8x8xf32>
    %57 = vector.extract_strided_slice %18 {offsets = [0, 16], sizes = [8, 8], strides = [1, 1]} : vector<8x32xbf16> to vector<8x8xbf16>
    %58 = vector.extract_strided_slice %19 {offsets = [0, 16], sizes = [8, 8], strides = [1, 1]} : vector<8x32xbf16> to vector<8x8xbf16>
    %59 = vector.extract_strided_slice %20 {offsets = [0, 16], sizes = [8, 8], strides = [1, 1]} : vector<8x32xbf16> to vector<8x8xbf16>
    %cst_26 = arith.constant dense<0.000000e+00> : vector<8x8xf32>
    %60 = tpu.matmul %57, %58, %cst_26 {dimension_numbers = #tpu.dot_dimension_numbers<[1], [1], [0], [0], [0, 0, 1, 0], [], []>} : vector<8x8xbf16>, vector<8x8xbf16>, vector<8x8xf32> -> vector<8x8xf32>
    %61 = vector.broadcast %9 : vector<1x8xf32> to vector<8x8xf32>
    %62 = arith.addf %60, %61 : vector<8x8xf32>
    %cst_27 = arith.constant dense<0xFF800000> : vector<8xf32>
    %63 = vector.multi_reduction <maximumf>, %62, %cst_27 [1] : vector<8x8xf32> to vector<8xf32>
    %64 = vector.shape_cast %63 : vector<8xf32> to vector<8x1xf32>
    %65 = vector.broadcast %64 : vector<8x1xf32> to vector<8x8xf32>
    %66 = arith.subf %62, %65 : vector<8x8xf32>
    %67 = math.exp %66 : vector<8x8xf32>
    %cst_28 = arith.constant dense<0.000000e+00> : vector<8xf32>
    %68 = vector.multi_reduction <add>, %67, %cst_28 [1] : vector<8x8xf32> to vector<8xf32>
    %69 = vector.shape_cast %68 : vector<8xf32> to vector<8x1xf32>
    %70 = tpu.reciprocal %69 {approx = true} : vector<8x1xf32> -> vector<8x1xf32>
    %71 = vector.broadcast %70 : vector<8x1xf32> to vector<8x8xf32>
    %72 = arith.mulf %67, %71 : vector<8x8xf32>
    %73 = arith.truncf %72 : vector<8x8xf32> to vector<8x8xbf16>
    %cst_29 = arith.constant dense<0.000000e+00> : vector<8x8xf32>
    %74 = tpu.matmul %73, %59, %cst_29 {dimension_numbers = #tpu.dot_dimension_numbers<[1], [0], [0], [1], [0, 0, 1, 1], [], []>} : vector<8x8xbf16>, vector<8x8xbf16>, vector<8x8xf32> -> vector<8x8xf32>
    %75 = vector.extract_strided_slice %18 {offsets = [0, 24], sizes = [8, 8], strides = [1, 1]} : vector<8x32xbf16> to vector<8x8xbf16>
    %76 = vector.extract_strided_slice %19 {offsets = [0, 24], sizes = [8, 8], strides = [1, 1]} : vector<8x32xbf16> to vector<8x8xbf16>
    %77 = vector.extract_strided_slice %20 {offsets = [0, 24], sizes = [8, 8], strides = [1, 1]} : vector<8x32xbf16> to vector<8x8xbf16>
    %cst_30 = arith.constant dense<0.000000e+00> : vector<8x8xf32>
    %78 = tpu.matmul %75, %76, %cst_30 {dimension_numbers = #tpu.dot_dimension_numbers<[1], [1], [0], [0], [0, 0, 1, 0], [], []>} : vector<8x8xbf16>, vector<8x8xbf16>, vector<8x8xf32> -> vector<8x8xf32>
    %79 = vector.broadcast %9 : vector<1x8xf32> to vector<8x8xf32>
    %80 = arith.addf %78, %79 : vector<8x8xf32>
    %cst_31 = arith.constant dense<0xFF800000> : vector<8xf32>
    %81 = vector.multi_reduction <maximumf>, %80, %cst_31 [1] : vector<8x8xf32> to vector<8xf32>
    %82 = vector.shape_cast %81 : vector<8xf32> to vector<8x1xf32>
    %83 = vector.broadcast %82 : vector<8x1xf32> to vector<8x8xf32>
    %84 = arith.subf %80, %83 : vector<8x8xf32>
    %85 = math.exp %84 : vector<8x8xf32>
    %cst_32 = arith.constant dense<0.000000e+00> : vector<8xf32>
    %86 = vector.multi_reduction <add>, %85, %cst_32 [1] : vector<8x8xf32> to vector<8xf32>
    %87 = vector.shape_cast %86 : vector<8xf32> to vector<8x1xf32>
    %88 = tpu.reciprocal %87 {approx = true} : vector<8x1xf32> -> vector<8x1xf32>
    %89 = vector.broadcast %88 : vector<8x1xf32> to vector<8x8xf32>
    %90 = arith.mulf %85, %89 : vector<8x8xf32>
    %91 = arith.truncf %90 : vector<8x8xf32> to vector<8x8xbf16>
    %cst_33 = arith.constant dense<0.000000e+00> : vector<8x8xf32>
    %92 = tpu.matmul %91, %77, %cst_33 {dimension_numbers = #tpu.dot_dimension_numbers<[1], [0], [0], [1], [0, 0, 1, 1], [], []>} : vector<8x8xbf16>, vector<8x8xbf16>, vector<8x8xf32> -> vector<8x8xf32>
    %93 = tpu.concatenate %38, %56, %74, %92 in 1 : vector<8x8xf32>, vector<8x8xf32>, vector<8x8xf32>, vector<8x8xf32> -> vector<8x32xf32>
    %94 = arith.truncf %93 : vector<8x32xf32> to vector<8x32xbf16>
    %c0_34 = arith.constant 0 : index
    %c0_35 = arith.constant 0 : index
    %95 = vector.load %arg8[%c0_34, %c0_35] : memref<32x32xbf16, #tpu.memory_space<vmem>>, vector<32x32xbf16>
    %cst_36 = arith.constant dense<0.000000e+00> : vector<8x32xf32>
    %96 = tpu.matmul %94, %95, %cst_36 {dimension_numbers = #tpu.dot_dimension_numbers<[1], [0], [0], [1], [0, 0, 1, 1], [], []>} : vector<8x32xbf16>, vector<32x32xbf16>, vector<8x32xf32> -> vector<8x32xf32>
    %97 = arith.addf %96, %1 : vector<8x32xf32>
    %c0_37 = arith.constant 0 : index
    %c0_38 = arith.constant 0 : index
    %98 = vector.load %arg9[%c0_37, %c0_38] : memref<1x32xf32, #tpu.memory_space<vmem>>, vector<1x32xf32>
    %c0_39 = arith.constant 0 : index
    %c0_40 = arith.constant 0 : index
    %99 = vector.load %arg10[%c0_39, %c0_40] : memref<1x32xf32, #tpu.memory_space<vmem>>, vector<1x32xf32>
    %cst_41 = arith.constant dense<0.000000e+00> : vector<8xf32>
    %100 = vector.multi_reduction <add>, %97, %cst_41 [1] : vector<8x32xf32> to vector<8xf32>
    %101 = vector.shape_cast %100 : vector<8xf32> to vector<8x1xf32>
    %cst_42 = arith.constant 3.200000e+01 : f32
    %102 = vector.broadcast %cst_42 : f32 to vector<8x1xf32>
    %103 = arith.divf %101, %102 : vector<8x1xf32>
    %104 = vector.broadcast %103 : vector<8x1xf32> to vector<8x32xf32>
    %105 = arith.subf %97, %104 : vector<8x32xf32>
    %106 = arith.mulf %105, %105 : vector<8x32xf32>
    %cst_43 = arith.constant dense<0.000000e+00> : vector<8xf32>
    %107 = vector.multi_reduction <add>, %106, %cst_43 [1] : vector<8x32xf32> to vector<8xf32>
    %108 = vector.shape_cast %107 : vector<8xf32> to vector<8x1xf32>
    %cst_44 = arith.constant 3.200000e+01 : f32
    %109 = vector.broadcast %cst_44 : f32 to vector<8x1xf32>
    %110 = arith.divf %108, %109 : vector<8x1xf32>
    %111 = vector.broadcast %103 : vector<8x1xf32> to vector<8x32xf32>
    %112 = arith.subf %97, %111 : vector<8x32xf32>
    %cst_45 = arith.constant 9.99999974E-6 : f32
    %113 = vector.broadcast %cst_45 : f32 to vector<8x1xf32>
    %114 = arith.addf %110, %113 : vector<8x1xf32>
    %115 = math.rsqrt %114 : vector<8x1xf32>
    %116 = vector.broadcast %115 : vector<8x1xf32> to vector<8x32xf32>
    %117 = arith.mulf %112, %116 : vector<8x32xf32>
    %118 = vector.broadcast %98 : vector<1x32xf32> to vector<8x32xf32>
    %119 = arith.mulf %117, %118 : vector<8x32xf32>
    %120 = vector.broadcast %99 : vector<1x32xf32> to vector<8x32xf32>
    %121 = arith.addf %119, %120 : vector<8x32xf32>
    %122 = arith.truncf %121 : vector<8x32xf32> to vector<8x32xbf16>
    %c0_46 = arith.constant 0 : index
    %c0_47 = arith.constant 0 : index
    %123 = vector.load %arg11[%c0_46, %c0_47] : memref<32x64xbf16, #tpu.memory_space<vmem>>, vector<32x64xbf16>
    %cst_48 = arith.constant dense<0.000000e+00> : vector<8x64xf32>
    %124 = tpu.matmul %122, %123, %cst_48 {dimension_numbers = #tpu.dot_dimension_numbers<[1], [0], [0], [1], [0, 0, 1, 1], [], []>} : vector<8x32xbf16>, vector<32x64xbf16>, vector<8x64xf32> -> vector<8x64xf32>
    %c0_49 = arith.constant 0 : index
    %c0_50 = arith.constant 0 : index
    %125 = vector.load %arg12[%c0_49, %c0_50] : memref<1x64xf32, #tpu.memory_space<vmem>>, vector<1x64xf32>
    %126 = vector.broadcast %125 : vector<1x64xf32> to vector<8x64xf32>
    %127 = arith.addf %124, %126 : vector<8x64xf32>
    %cst_51 = arith.constant 0.000000e+00 : f32
    %128 = vector.broadcast %cst_51 : f32 to vector<8x64xf32>
    %129 = arith.maximumf %127, %128 : vector<8x64xf32>
    %130 = arith.truncf %129 : vector<8x64xf32> to vector<8x64xbf16>
    %c0_52 = arith.constant 0 : index
    %c0_53 = arith.constant 0 : index
    %131 = vector.load %arg13[%c0_52, %c0_53] : memref<64x32xbf16, #tpu.memory_space<vmem>>, vector<64x32xbf16>
    %cst_54 = arith.constant dense<0.000000e+00> : vector<8x32xf32>
    %132 = tpu.matmul %130, %131, %cst_54 {dimension_numbers = #tpu.dot_dimension_numbers<[1], [0], [0], [1], [0, 0, 1, 1], [], []>} : vector<8x64xbf16>, vector<64x32xbf16>, vector<8x32xf32> -> vector<8x32xf32>
    %c0_55 = arith.constant 0 : index
    %c0_56 = arith.constant 0 : index
    %133 = vector.load %arg14[%c0_55, %c0_56] : memref<1x32xf32, #tpu.memory_space<vmem>>, vector<1x32xf32>
    %134 = vector.broadcast %133 : vector<1x32xf32> to vector<8x32xf32>
    %135 = arith.addf %132, %134 : vector<8x32xf32>
    %136 = arith.addf %135, %121 : vector<8x32xf32>
    %c0_57 = arith.constant 0 : index
    %c0_58 = arith.constant 0 : index
    %137 = vector.load %arg15[%c0_57, %c0_58] : memref<1x32xf32, #tpu.memory_space<vmem>>, vector<1x32xf32>
    %c0_59 = arith.constant 0 : index
    %c0_60 = arith.constant 0 : index
    %138 = vector.load %arg16[%c0_59, %c0_60] : memref<1x32xf32, #tpu.memory_space<vmem>>, vector<1x32xf32>
    %cst_61 = arith.constant dense<0.000000e+00> : vector<8xf32>
    %139 = vector.multi_reduction <add>, %136, %cst_61 [1] : vector<8x32xf32> to vector<8xf32>
    %140 = vector.shape_cast %139 : vector<8xf32> to vector<8x1xf32>
    %cst_62 = arith.constant 3.200000e+01 : f32
    %141 = vector.broadcast %cst_62 : f32 to vector<8x1xf32>
    %142 = arith.divf %140, %141 : vector<8x1xf32>
    %143 = vector.broadcast %142 : vector<8x1xf32> to vector<8x32xf32>
    %144 = arith.subf %136, %143 : vector<8x32xf32>
    %145 = arith.mulf %144, %144 : vector<8x32xf32>
    %cst_63 = arith.constant dense<0.000000e+00> : vector<8xf32>
    %146 = vector.multi_reduction <add>, %145, %cst_63 [1] : vector<8x32xf32> to vector<8xf32>
    %147 = vector.shape_cast %146 : vector<8xf32> to vector<8x1xf32>
    %cst_64 = arith.constant 3.200000e+01 : f32
    %148 = vector.broadcast %cst_64 : f32 to vector<8x1xf32>
    %149 = arith.divf %147, %148 : vector<8x1xf32>
    %150 = vector.broadcast %142 : vector<8x1xf32> to vector<8x32xf32>
    %151 = arith.subf %136, %150 : vector<8x32xf32>
    %cst_65 = arith.constant 9.99999974E-6 : f32
    %152 = vector.broadcast %cst_65 : f32 to vector<8x1xf32>
    %153 = arith.addf %149, %152 : vector<8x1xf32>
    %154 = math.rsqrt %153 : vector<8x1xf32>
    %155 = vector.broadcast %154 : vector<8x1xf32> to vector<8x32xf32>
    %156 = arith.mulf %151, %155 : vector<8x32xf32>
    %157 = vector.broadcast %137 : vector<1x32xf32> to vector<8x32xf32>
    %158 = arith.mulf %156, %157 : vector<8x32xf32>
    %159 = vector.broadcast %138 : vector<1x32xf32> to vector<8x32xf32>
    %160 = arith.addf %158, %159 : vector<8x32xf32>
    %c0_66 = arith.constant 0 : index
    %c0_67 = arith.constant 0 : index
    %c0_68 = arith.constant 0 : index
    %161 = vector.load %arg17[%c0_66, %c0_67, %c0_68] : memref<1x8x32xf32, #tpu.memory_space<vmem>>, vector<1x8x32xf32>
    %162 = vector.shape_cast %161 : vector<1x8x32xf32> to vector<8x32xf32>
    %163 = vector.shape_cast %160 : vector<8x32xf32> to vector<1x8x32xf32>
    tpu.vector_store %arg17[%c0_66, %c0_67, %c0_68], %163 {strides = array<i32>} : memref<1x8x32xf32, #tpu.memory_space<vmem>>, vector<1x8x32xf32>,
    return
  }
  func.func @transform_0(%arg0: i32, %arg1: i32) -> (i32, i32, i32) {
    %c0_i32 = arith.constant 0 : i32
    %c0_i32_0 = arith.constant 0 : i32
    return %arg0, %arg1, %c0_i32 : i32, i32, i32
  }
  func.func @transform_1(%arg0: i32, %arg1: i32) -> (i32, i32, i32) {
    %c0_i32 = arith.constant 0 : i32
    %c0_i32_0 = arith.constant 0 : i32
    %c0_i32_1 = arith.constant 0 : i32
    return %arg0, %c0_i32, %c0_i32_0 : i32, i32, i32
  }
  func.func @transform_2(%arg0: i32, %arg1: i32) -> (i32, i32, i32) {
    %c0_i32 = arith.constant 0 : i32
    %c0_i32_0 = arith.constant 0 : i32
    %c0_i32_1 = arith.constant 0 : i32
    return %arg0, %c0_i32, %c0_i32_0 : i32, i32, i32
  }
  func.func @transform_3(%arg0: i32, %arg1: i32) -> (i32, i32) {
    %c0_i32 = arith.constant 0 : i32
    %c0_i32_0 = arith.constant 0 : i32
    %c0_i32_1 = arith.constant 0 : i32
    return %c0_i32, %c0_i32_0 : i32, i32
  }
  func.func @transform_4(%arg0: i32, %arg1: i32) -> (i32, i32) {
    %c0_i32 = arith.constant 0 : i32
    %c0_i32_0 = arith.constant 0 : i32
    %c0_i32_1 = arith.constant 0 : i32
    return %c0_i32, %c0_i32_0 : i32, i32
  }
  func.func @transform_5(%arg0: i32, %arg1: i32) -> (i32, i32) {
    %c0_i32 = arith.constant 0 : i32
    %c0_i32_0 = arith.constant 0 : i32
    %c0_i32_1 = arith.constant 0 : i32
    return %c0_i32, %c0_i32_0 : i32, i32
  }
  func.func @transform_6(%arg0: i32, %arg1: i32) -> (i32, i32) {
    %c0_i32 = arith.constant 0 : i32
    %c0_i32_0 = arith.constant 0 : i32
    %c0_i32_1 = arith.constant 0 : i32
    return %c0_i32, %c0_i32_0 : i32, i32
  }
  func.func @transform_7(%arg0: i32, %arg1: i32) -> (i32, i32) {
    %c0_i32 = arith.constant 0 : i32
    %c0_i32_0 = arith.constant 0 : i32
    %c0_i32_1 = arith.constant 0 : i32
    return %c0_i32, %c0_i32_0 : i32, i32
  }
  func.func @transform_8(%arg0: i32, %arg1: i32) -> (i32, i32) {
    %c0_i32 = arith.constant 0 : i32
    %c0_i32_0 = arith.constant 0 : i32
    %c0_i32_1 = arith.constant 0 : i32
    return %c0_i32, %c0_i32_0 : i32, i32
  }
  func.func @transform_9(%arg0: i32, %arg1: i32) -> (i32, i32) {
    %c0_i32 = arith.constant 0 : i32
    %c0_i32_0 = arith.constant 0 : i32
    %c0_i32_1 = arith.constant 0 : i32
    return %c0_i32, %c0_i32_0 : i32, i32
  }
  func.func @transform_10(%arg0: i32, %arg1: i32) -> (i32, i32) {
    %c0_i32 = arith.constant 0 : i32
    %c0_i32_0 = arith.constant 0 : i32
    %c0_i32_1 = arith.constant 0 : i32
    return %c0_i32, %c0_i32_0 : i32, i32
  }
  func.func @transform_11(%arg0: i32, %arg1: i32) -> (i32, i32) {
    %c0_i32 = arith.constant 0 : i32
    %c0_i32_0 = arith.constant 0 : i32
    %c0_i32_1 = arith.constant 0 : i32
    return %c0_i32, %c0_i32_0 : i32, i32
  }
  func.func @transform_12(%arg0: i32, %arg1: i32) -> (i32, i32) {
    %c0_i32 = arith.constant 0 : i32
    %c0_i32_0 = arith.constant 0 : i32
    %c0_i32_1 = arith.constant 0 : i32
    return %c0_i32, %c0_i32_0 : i32, i32
  }
  func.func @transform_13(%arg0: i32, %arg1: i32) -> (i32, i32) {
    %c0_i32 = arith.constant 0 : i32
    %c0_i32_0 = arith.constant 0 : i32
    %c0_i32_1 = arith.constant 0 : i32
    return %c0_i32, %c0_i32_0 : i32, i32
  }
  func.func @transform_14(%arg0: i32, %arg1: i32) -> (i32, i32) {
    %c0_i32 = arith.constant 0 : i32
    %c0_i32_0 = arith.constant 0 : i32
    %c0_i32_1 = arith.constant 0 : i32
    return %c0_i32, %c0_i32_0 : i32, i32
  }
  func.func @transform_15(%arg0: i32, %arg1: i32) -> (i32, i32, i32) {
    %c0_i32 = arith.constant 0 : i32
    %c0_i32_0 = arith.constant 0 : i32
    return %arg0, %arg1, %c0_i32 : i32, i32, i32
  }
}

</mosaic_0001>

<bundles_post_ra>
// kernel: tpu_custom_call.1
= control target key start
LH: loop header
LB: loop body
LE: loop exit
PB: predicated region body
PF: predicated region fallthrough
CT: control target
= control target key end

     0   :  { %s2774_s0 = inlined_call_operand.vmem [shape: f32[2,8,32], index: 0, kind: input, shape index: {}]   ;;  %s2775_s1 = inlined_call_operand.vmem [shape: f32[2,8,32], index: 1, kind: input, shape index: {}]   ;;  %s2776_s2 = inlined_call_operand.hbm [shape: f32[2,1,8], index: 2, kind: input, shape index: {}]   ;;  %s2777_s3 = inlined_call_operand.vmem [shape: bf16[32,32], index: 3, kind: input, shape index: {}]   ;;  %s2778_s4 = inlined_call_operand.hbm [shape: bf16[32,32], index: 4, kind: input, shape index: {}]   ;;  %s2779_s5 = inlined_call_operand.hbm [shape: bf16[32,32], index: 5, kind: input, shape index: {}]   ;;  %s2780_s6 = inlined_call_operand.hbm [shape: bf16[32,32], index: 6, kind: input, shape index: {}]   ;;  %s2781_s7 = inlined_call_operand.hbm [shape: f32[1,32], index: 7, kind: input, shape index: {}]   ;;  %s2782_s8 = inlined_call_operand.hbm [shape: f32[1,32], index: 8, kind: input, shape index: {}]   ;;  %s2783_s9 = inlined_call_operand.vmem [shape: bf16[32,64], index: 9, kind: input, shape index: {}]   ;;  %s2784_s10 = inlined_call_operand.vmem [shape: f32[1,64], index: 10, kind: input, shape index: {}]   ;;  %s2785_s11 = inlined_call_operand.vmem [shape: bf16[64,32], index: 11, kind: input, shape index: {}]   ;;  %s2786_s12 = inlined_call_operand.vmem [shape: f32[1,32], index: 12, kind: input, shape index: {}]   ;;  %s2787_s13 = inlined_call_operand.vmem [shape: f32[1,32], index: 13, kind: input, shape index: {}]   ;;  %s2788_s14 = inlined_call_operand.vmem [shape: f32[1,32], index: 14, kind: input, shape index: {}]   ;;  %s2789_s15 = inlined_call_operand.hbm [shape: f32[2,8,32], index: 15, kind: output, shape index: {}]  }
   0x1   :  { %2796 = sst [smem:[#allocation20_spill]] %s2778_s4 }
   0x2   :  { %2797 = sst [smem:[#allocation21_spill]] %s2779_s5 }
   0x3   :  { %2798 = sst [smem:[#allocation22_spill]] %s2780_s6 }
   0x4   :  { %2799 = sst [smem:[#allocation23_spill]] %s2781_s7 }
   0x5   :  { %2800 = sst [smem:[#allocation24_spill]] %s2782_s8 }
   0x6   :  { %2801 = sst [smem:[#allocation25_spill]] %s2784_s10 }
   0x7   :  { %2802 = sst [smem:[#allocation26_spill]] %s2786_s12 }
   0x8   :  { %2803 = sst [smem:[#allocation27_spill]] %s2787_s13 }
   0x9   :  { %2804 = sst [smem:[#allocation28_spill]] %s2788_s14 }
   0xa   :  { %2805 = sst [smem:[#allocation29_spill]] %s2789_s15 }
   0xb   :  { %20 = vsyncpa [#allocation3], 0 }
   0xc   :  { %22 = vsyncpa [#allocation3 + $0x1], 0 }
   0xd   :  { %23 = vsyncpa [#allocation6], 0 }
   0xe   :  { %24 = vsyncpa [#allocation9], 0 }
   0xf   :  { %25 = vsyncpa [#allocation12], 0 }
  0x10   :  { %26 = vsyncpa [#allocation4], 0 }
  0x11   :  { %28 = vsyncpa [#allocation4 + $0x1], 0  ;;  %s2421_s18 = smov 0   ;;  %s2423_s19 = smov 0  }
  0x12   :  { %s2425_s20 = smov 0   ;;  %s2427_s21 = smov 0  }
  0x13   :  { %s2429_s22 = smov 0   ;;  %s2431_s23 = smov 0  }
  0x14 LB: > { %s2790_s24 = sadd.s32 4294967295, %s2322_s23   ;;  %p1724_p0 = scmp.ge.s32.totalorder %s2322_s23, 1  ;;  %s2322_s23 = sphi %s2431_s23, %s34_s23   ;;  %s2318_s22 = sphi %s2429_s22, %s2836_s22   ;;  %s2314_s21 = sphi %s2427_s21, %s2835_s21   ;;  %s2310_s20 = sphi %s2425_s20, %s2834_s20   ;;  %s2306_s19 = sphi %s2423_s19, %s2833_s19   ;;  %s2302_s18 = sphi %s2421_s18, %s2832_s18  }
  0x15   : > { %p2455_p1 = scmp.eq.s32.totalorder %s2790_s24, 0  ;;  %p411_p2 = scmp.lt.s32.totalorder %s2322_s23, 3 }
  0x16   : > { %s2324_s27 = smov [#allocation5]   ;;  %s2325_s30 = smov [#allocation8]  }
  0x17   : > { %s2806_s25 = scalar_select %p2455_p1, 1, 0 }
  0x18   : > { %p2460_p3 = pnand %p1724_p0, %p411_p2  ;;  %s426_s28 = sshll.u32 %s2324_s27, 4  ;;  %s427_s28 = int_to_ptr.vmem [resolvable:$true] %s426_s28 }
  0x19   : > { %s452_s16 = sshll.u32 %s2325_s30, 4  ;;  %s2326_s17 = smov [#allocation7]   ;;  %s453_s16 = int_to_ptr.vmem [resolvable:$true] %s452_s16 }
  0x1a   : > { %s2807_s26 = scalar_select %p2460_p3, 1, 0 }
  0x1b   : > { %p1939_p4 = pneg %p2460_p3  ;;  %s439_s24 = sshll.u32 %s2326_s17, 4  ;;  %s440_s24 = int_to_ptr.vmem [resolvable:$true] %s439_s24 }
  0x1c   : > { %s2083_s27 = scalar_lea.vmem %s427_s28, 256  ;;  %p2091_p11 = scmp.lt.s32.totalorder %s427_s28, %s427_s28 }
  0x1d   : > { %p2469_p6 = pnand %p1939_p4, %p2455_p1  ;;  %p2084_p8 = scmp.ne.s32.totalorder %s427_s28, %s2083_s27 }
  0x1e   : > { %p2092_p12 = scmp.lt.s32.totalorder %s2083_s27, %s2083_s27 }
  0x1f   : > { %p2475_p7 = pneg %p2469_p6 }
  0x20   : > { %p2093_p13 = por %p2092_p12, %p2091_p11 }
  0x21   : > { %p2086_p9 = pnand %p2084_p8, %p2475_p7 }
  0x23   : > { %p2087_p10 = pneg %p2086_p9 }
  0x25   : > { %p2094_p0 = pnand %p2093_p13, %p2087_p10 }
  0x27   : > { %2097 = shalt.err (!%p2094_p0)
}
  0x28   : > { %s2327_s30 = smov 64   ;;  %s2328_s17 = smov 4  }
  0x29   : > { %s2810_s4 = sld [smem:[#allocation20_spill]]  ;;  %s2109_s12 = scalar_lea.vmem %s453_s16, 256 }
  0x2a   : > { %p2110_p2 = scmp.ne.s32.totalorder %s453_s16, %s2109_s12  ;;  %p2117_p9 = scmp.lt.s32.totalorder %s453_s16, %s453_s16 }
  0x2b   : > { %p2118_p5 = scmp.lt.s32.totalorder %s2109_s12, %s2109_s12 }
  0x2c   : > { %p2112_p4 = pnand %p2110_p2, %p2475_p7 }
  0x2d   : > { %p2119_p3 = por %p2118_p5, %p2117_p9 }
  0x2e   : > { %p2113_p8 = pneg %p2112_p4 }
  0x2f   : > { %1942 = dma.hbm_to_vmem [thread:$0]  (!%p2469_p6), %s2810_s4, 256, %s427_s28, [#allocation6], %s2327_s30, %s2327_s30, %s2328_s17  }
  0x30   : > { %p2120_p11 = pnand %p2119_p3, %p2113_p8 }
  0x32   : > { %2123 = shalt.err (!%p2120_p11)
}
  0x33   : > { %s2811_s6 = sld [smem:[#allocation22_spill]]  ;;  %s2135_s13 = scalar_lea.vmem %s440_s24, 256 }
  0x34   : > { %p2136_p10 = scmp.ne.s32.totalorder %s440_s24, %s2135_s13  ;;  %p2143_p0 = scmp.lt.s32.totalorder %s440_s24, %s440_s24 }
  0x35   : > { %p2144_p2 = scmp.lt.s32.totalorder %s2135_s13, %s2135_s13 }
  0x36   : > { %p2138_p12 = pnand %p2136_p10, %p2475_p7 }
  0x37   : > { %p2145_p4 = por %p2144_p2, %p2143_p0 }
  0x38   : > { %p2139_p13 = pneg %p2138_p12 }
  0x39   : > { %1948 = dma.hbm_to_vmem [thread:$0]  (!%p2469_p6), %s2811_s6, 256, %s453_s16, [#allocation9], %s2327_s30, %s2327_s30, %s2328_s17  }
  0x3a   : > { %p2146_p1 = pnand %p2145_p4, %p2139_p13 }
  0x3c   : > { %2149 = shalt.err (!%p2146_p1)
}
  0x3d   : > { %s2812_s5 = sld [smem:[#allocation21_spill]]  ;;  %s2329_s10 = smov [#allocation10]  }
  0x3e   : > { %s466_s28 = sshll.u32 %s2329_s10, 4  ;;  %s2330_s16 = smov [#allocation11]   ;;  %s467_s28 = int_to_ptr.vmem [resolvable:$true] %s466_s28 }
  0x3f   : > { %s477_s27 = sshll.u32 %s2330_s16, 4  ;;  %s2161_s4 = scalar_lea.vmem %s467_s28, 16  ;;  %s478_s27 = int_to_ptr.vmem [resolvable:$true] %s477_s27 }
  0x40   : > { %p2162_p3 = scmp.ne.s32.totalorder %s467_s28, %s2161_s4  ;;  %s2168_s13 = scalar_lea.vmem %s467_s28, 32 }
  0x41   : > { %p2169_p9 = scmp.lt.s32.totalorder %s467_s28, %s467_s28  ;;  %p2170_p1 = scmp.lt.s32.totalorder %s2168_s13, %s2161_s4 }
  0x42   : > { %p2164_p5 = pnand %p2162_p3, %p2475_p7 }
  0x43   : > { %1945 = dma.hbm_to_vmem [thread:$0]  (!%p2469_p6), %s2812_s5, 256, %s440_s24, [#allocation6], %s2327_s30, %s2327_s30, %s2328_s17  }
  0x44   : > { %p2165_p8 = pneg %p2164_p5  ;;  %p2171_p11 = por %p2170_p1, %p2169_p9 }
  0x46   : > { %p2172_p10 = pnand %p2171_p11, %p2165_p8 }
  0x48   : > { %2175 = shalt.err (!%p2172_p10)
}
  0x49   : > { %s2813_s7 = sld [smem:[#allocation23_spill]]  ;;  %s2187_s30 = scalar_lea.vmem %s478_s27, 16 }
  0x4a   : > { %p2188_p12 = scmp.ne.s32.totalorder %s478_s27, %s2187_s30  ;;  %s2194_s17 = scalar_lea.vmem %s478_s27, 32 }
  0x4b   : > { %p2195_p2 = scmp.lt.s32.totalorder %s478_s27, %s478_s27  ;;  %p2196_p4 = scmp.lt.s32.totalorder %s2194_s17, %s2187_s30 }
  0x4c   : > { %p2190_p13 = pnand %p2188_p12, %p2475_p7 }
  0x4d   : > { %p2197_p3 = por %p2196_p4, %p2195_p2 }
  0x4e   : > { %p2191_p0 = pneg %p2190_p13 }
  0x4f   : > { %1951 = dma.hbm_to_vmem [thread:$0]  (!%p2469_p6), %s2813_s7, 16, %s467_s28, [#allocation9]  }
  0x50   : > { %p2198_p5 = pnand %p2197_p3, %p2191_p0 }
  0x52   : > { %2201 = shalt.err (!%p2198_p5)
}
  0x53   : > { %s2814_s8 = sld [smem:[#allocation24_spill]]  ;;  %s1723_s15 = sadd.s32 4294967294, %s2322_s23  }
  0x54   : > { %s46_s10 = sadd.s32 1, %s2318_s22  ;;  %s107_s29 = sadd.s32 1, %s2310_s20 }
  0x55   : > { %p48_p7 = scmp.ge.s32.totalorder %s46_s10, 2  ;;  %p114_p8 = scmp.ne.s32.totalorder %s2310_s20, %s2306_s19 }
  0x56   : > { %p115_p9 = scmp.eq.s32.totalorder %s2322_s23, 0  ;;  %p120_p1 = scmp.ne.s32.totalorder %s2306_s19, %s2302_s18 }
  0x57   : > { %s2838_s10 = smov (%p48_p7, %s46_s10), 0  ;;  %p2817_p10 = scmp.ne.s32.totalorder %s2806_s25, 0 }
  0x58   : > { %2815 = sst [smem:[#allocation19_spill]] %s2838_s10  ;;  %p2524_p11 = por %p115_p9, %p114_p8 }
  0x59   : > { %1954 = dma.hbm_to_vmem [thread:$0]  (!%p2469_p6), %s2814_s8, 16, %s478_s27, [#allocation12]  }
  0x5a   : > { %p2530_p6 = por %p2817_p10, %p120_p1  ;;  %s104_s27 = ssub.s32 %s2318_s22, %s2838_s10 }
  0x5b   : > { %s2819_s13 = sadd.s32 4294967295, %s2322_s23   ;;  %p105_p13 = scmp.eq.s32.totalorder %s104_s27, 0 }
  0x5c   : > { %p398_p12 = scmp.eq.s32.totalorder %s2819_s13, 1  ;;  %p404_p0 = scmp.eq.s32.totalorder %s1723_s15, 1 }
  0x5d   : > { %p1968_p4 = scmp.lt.s32.totalorder %s2322_s23, 2  ;;  %s523_s17 = sand.u32 1, %s2310_s20  }
  0x5e   : > { %p2538_p2 = por %p398_p12, %p114_p8  ;;  %p2546_p3 = por %p404_p0, %p120_p1 }
  0x5f   : > { %s2544_s24 = scalar_select %p105_p13, %s2310_s20, %s107_s29  }
  0x60   : > { %s1731_s4 = sshll.u32 %s2318_s22, 4  ;;  %s526_s14 = scalar_lea.vmem [#allocation2], %s523_s17 }
  0x61   : > { %s533_s5 = sshll.u32 %s526_s14, 4  ;;  %s531_s27 = scalar_lea.hbm %s2776_s2, %s1731_s4  ;;  %s534_s5 = int_to_ptr.vmem [resolvable:$true] %s533_s5 }
  0x62   : > { %p2557_p5 = pnand %p1968_p4, %p2524_p11  ;;  %s524_s29 = scalar_lea.sflag [#allocation3], %s523_s17 }
  0x63   : > { %s2215_s13 = scalar_lea.vmem %s534_s5, 16  ;;  %s2331_s8 = smov [#allocation2]  }
  0x64   : > { %p2204_p7 = pneg %p2557_p5  ;;  %p2216_p8 = scmp.ne.s32.totalorder %s534_s5, %s2215_s13 }
  0x65   : > { %s2220_s14 = sshll.u32 %s2331_s8, 4  ;;  %s2221_s14 = int_to_ptr.vmem [resolvable:$false] %s2220_s14 }
  0x66   : > { %p2218_p9 = pnand %p2216_p8, %p2204_p7  ;;  %s2222_s10 = scalar_lea.vmem %s2221_s14, 32 }
  0x67   : > { %p2223_p10 = scmp.lt.s32.totalorder %s534_s5, %s2221_s14  ;;  %p2224_p12 = scmp.lt.s32.totalorder %s2222_s10, %s2215_s13 }
  0x68   : > { %p2219_p1 = pneg %p2218_p9 }
  0x69   : > { %p2225_p13 = por %p2224_p12, %p2223_p10 }
  0x6b   : > { %p2226_p0 = pnand %p2225_p13, %p2219_p1 }
  0x6d   : > { %2229 = shalt.err (!%p2226_p0)
}
  0x6e   : > { %1958 = dma.hbm_to_vmem [thread:$0]  (!%p2557_p5), %s531_s27, 16, %s534_s5, %s524_s29  }
  0x6f   : > { %p2823_p11 = scmp.ne.s32.totalorder %s2807_s26, 0 }
  0x70   : > { %s2568_s6 = sand.u32 (!%p2823_p11), 1, %s2306_s19  }
  0x71   : > { %542 = sbr.rel (%p2823_p11) target bundleno = 2512 (0x9d0), region = 80  ;;  %s545_s7 = scalar_lea.sflag (!%p2823_p11), [#allocation3], %s2568_s6 }
  0x72   : > { %s547_s8 = scalar_lea.vmem (!%p2823_p11), [#allocation2], %s2568_s6 }
  0x76   : > { %2281 = dma.done.wait (%p2530_p6), %s545_s7, 16  }
  0x77   : > { %2283 = vsyncadd (%p2530_p6), %s545_s7, 4294967280  ;;  %p2824_p4 = scmp.ne.s32.totalorder %s2806_s25, 0 }
  0x79   : > { %2285 = dma.done.wait (%p2824_p4), [#allocation6], 512  }
  0x7a   : > { %2287 = vsyncadd (%p2824_p4), [#allocation6], 4294966784 }
  0x7b   : > { %2289 = dma.done.wait (%p2824_p4), [#allocation9], 272  }
  0x7c   : > { %2291 = vsyncadd (%p2824_p4), [#allocation9], 4294967024 }
  0x7d   : > { %2293 = dma.done.wait (%p2824_p4), [#allocation12], 16  }
  0x7e   : > { %2295 = vsyncadd (%p2824_p4), [#allocation12], 4294967280  ;;  %p624_p6 = scmp.lt.s32.totalorder %s2314_s21, 1  ;;  %v2332_v0 = vmov 0.0   ;;  %vm2333_vm0 = vmmov 0   ;;  %v2038_v1 = vld [vmem:[%s2777_s3 + $0x8] sm:$0xff]   ;;  %v822_v32 = vlaneseq }
  0x7f   : > { %1815 = vmatprep.subr.bf16.mxu0 %v2332_v0  ;;  %1823 = vmatprep.subr.bf16.mxu1 %v2332_v0  ;;  %v2039_v2 = vld [vmem:[#allocation5 + $0x8] sm:$0xff]   ;;  %v2040_v3 = vld [vmem:[%s2777_s3] sm:$0xff]   ;;  %vm658_vm1 = vcmask 261120   ;;  %vm827_vm2 = vcmask 64512   ;;  %s2334_s14 = smov 112   ;;  %s2335_s7 = smov 120  }
  0x80   : > { %1819 = vmatprep.mubr.msk.bf16.mxu0 %vm2333_vm0, %v2332_v0  ;;  %1827 = vmatprep.mubr.msk.bf16.mxu1 %vm2333_vm0, %v2332_v0  ;;  %s625_s5 = scalar_select %p624_p6, %s2314_s21, 1  ;;  %v2041_v4 = vld [vmem:[#allocation5] sm:$0xff]   ;;  %v2042_v21 = vld [vmem:[#allocation7 + $0x8] sm:$0xff]   ;;  %v2043_v22 = vld [vmem:[#allocation7] sm:$0xff]   ;;  %v823_v33 = vshrl.u32 %v822_v32, 7  ;;  %vm889_vm3 = vcmask 1043456  }
  0x81   : > { %1816 = vmatpush3.bf16.msra.mxu0 %v2038_v1  ;;  %1824 = vmatpush3.bf16.msra.mxu1 %v2039_v2  ;;  %v640_v34 = vld [vmem:[%s547_s8] sm:$0x1]  ;;  %s2337_s8 = smov 8   ;;  %s2339_s10 = smov 24   ;;  %vm1279_vm4 = vcmask 130048   ;;  %vm1281_vm5 = vcmask 195584  }
  0x82   : > { %s1739_s26 = sshll.u32 %s625_s5, 3  ;;  %1817 = vmatprep.subr.bf16.mxu0 %v2332_v0  ;;  %1825 = vmatprep.subr.bf16.mxu1 %v2332_v0  ;;  %s2336_s5 = smov 104   ;;  %v641_v35 = vmul.f32 -1e+09, %v640_v34  ;;  %v824_v36 = vsub.s32 0, %v823_v33  ;;  %vm1481_vm6 = vcmask 523264  }
  0x83   : > { %s630_s17 = scalar_lea.vmem %s2774_s0, %s1739_s26  ;;  %s634_s15 = scalar_lea.vmem %s2775_s1, %s1739_s26 }
  0x84   : > { %v2610_v5 = vld [vmem:[%s630_s17] sm:$0xff]  ;;  %v825_v37 = vrot.slane %v641_v35, %v824_v36  ;;  %s2338_s26 = smov 16   ;;  %s2826_s16 = sld [smem:[#allocation26_spill]] }
  0x85   : > { %v638_v6 = vld [vmem:[%s634_s15] sm:$0xff]  ;;  %v637_v7 = vpack.c.bf16 %v2610_v5, %v2610_v5  ;;  %1818 = vmatpush3.bf16.msra.mxu0 %v2040_v3  ;;  %1826 = vmatpush3.bf16.msra.mxu1 %v2041_v4  ;;  %s1738_s17 = sshll.u32 %s2568_s6, 3  ;;  %s2827_s15 = sld [smem:[#allocation27_spill]] }
  0x86   : > { %v639_v8 = vpack.c.bf16 %v638_v6, %v638_v6  ;;  %1831 = vmatprep.subr.bf16.mxu0 %v2332_v0  ;;  %1839 = vmatprep.subr.bf16.mxu1 %v2332_v0  ;;  %s2829_s25 = sld [smem:[#allocation29_spill]]  ;;  %s2340_s27 = smov [#allocation13]  }
  0x88   : > { %1820 = vmatmul.mubr.msk.bf16.vlgmr.msra.gmra.mxu0 %vm658_vm1, %v637_v7  ;;  %1828 = vmatmul.mubr.msk.bf16.vlgmr.msra.gmra.mxu1 %vm658_vm1, %v639_v8 }
  0x89   : > { %1835 = vmatprep.mubr.msk.bf16.mxu0 %vm2333_vm0, %v2332_v0  ;;  %1841 = vmatprep.mubr.msk.bf16.mxu1 %vm2333_vm0, %v2332_v0 }
  0x8a   : > { %1832 = vmatpush3.bf16.msra.mxu0 %v2042_v21 }
  0x8b   : > { %1833 = vmatprep.subr.bf16.mxu0 %v2332_v0 }
  0x8e   : > { %1834 = vmatpush3.bf16.msra.mxu0 %v2043_v22 }
  0x8f   : > { %1845 = vmatprep.subr.bf16.mxu0 %v2332_v0 }
  0x91   : > { %1836 = vmatmul.mubr.msk.bf16.vlgmr.msra.gmra.mxu0 %vm658_vm1, %v639_v8 }
  0x92   : > { %1847 = vmatprep.mubr.msk.bf16.mxu0 %vm2333_vm0, %v2332_v0 }
 0x148   : > { %v696_v9 = vpop.f32.mrf.mxu0  ;;  %v755_v11 = vpop.f32.mrf.mxu1 }
 0x149   : > { %v817_v10 = vmul.f32 0.35355338, %v696_v9  ;;  %v819_v12 = vpack.c.bf16 %v755_v11, %v755_v11 }
 0x14a   : > { %v1821_v13 = vpop.f32.mrf.mxu0  ;;  %v1829_v14 = vpop.f32.mrf.mxu1 }
 0x14b   : > { %v818_v15 = vpack.c.bf16 %v817_v10, %v817_v10  ;;  %1048 = vrot.lane.b32.xlu1 %v819_v12, %s2334_s14  ;;  %937 = vrot.lane.b32.xlu0 %v819_v12, %s2335_s7  ;;  %v832_v17 = vsel %vm827_vm2, %v819_v12, 0 }
 0x14c   : > { %v699_v16 = vpop.f32.mrf.mxu0  ;;  %v758_v18 = vpop.f32.mrf.mxu1  ;;  %1840 = vmatpush3.bf16.xpose.msra.mxu1 %v832_v17 }
 0x14d   : > { %1851 = vmatprep.subr.bf16.mxu1 %v2332_v0 }
 0x14e   : > { %v1822_v19 = vpop.f32.mrf.mxu0  ;;  %v1830_v20 = vpop.f32.mrf.mxu1 }
 0x14f   : > { %1046 = vrot.lane.b32.xlu1 %v818_v15, %s2334_s14  ;;  %934 = vrot.lane.b32.xlu0 %v818_v15, %s2335_s7 }
 0x151   : > { %v811_v44 = vpop.f32.mrf.mxu0 }
 0x152   : > { %v820_v45 = vpack.c.bf16 %v811_v44, %v811_v44 }
 0x153   : > { %1156 = vrot.lane.b32.xlu1 %v818_v15, %s2336_s5  ;;  %1158 = vrot.lane.b32.xlu0 %v819_v12, %s2336_s5  ;;  %v1837_v46 = vpop.f32.mrf.mxu0 }
 0x154   : > { %1842 = vmatmul.mubr.msk.bf16.vlgmr.msra.gmra.mxu1 %vm827_vm2, %v818_v15  ;;  %v891_v47 = vsel %vm889_vm3, %v820_v45, 0 }
 0x155   : > { %1853 = vmatprep.mubr.msk.bf16.mxu1 %vm2333_vm0, %v2332_v0  ;;  %v814_v48 = vpop.f32.mrf.mxu0  ;;  %1846 = vmatpush3.bf16.msra.mxu0 %v891_v47 }
 0x156   : > { %1857 = vmatprep.subr.bf16.mxu0 %v2332_v0 }
 0x157   : > { %v1838_v49 = vpop.f32.mrf.mxu0 }
 0x1bd   : > { %v938_v23 = vpop.permute.xlu0 %937  ;;  %v1049_v25 = vpop.permute.xlu1 %1048 }
 0x1be   : > { %v943_v24 = vsel %vm827_vm2, %v938_v23, 0  ;;  %v1054_v27 = vsel %vm827_vm2, %v1049_v25, 0 }
 0x1bf   : > { %1852 = vmatpush3.bf16.xpose.msra.mxu1 %v943_v24 }
 0x1c0   : > { %1863 = vmatprep.subr.bf16.mxu1 %v2332_v0 }
 0x1c1   : > { %v935_v26 = vpop.permute.xlu0 %934  ;;  %v1047_v29 = vpop.permute.xlu1 %1046 }
 0x1c5   : > { %v1159_v28 = vpop.permute.xlu0 %1158  ;;  %v1157_v31 = vpop.permute.xlu1 %1156 }
 0x1c6   : > { %1854 = vmatmul.mubr.msk.bf16.vlgmr.msra.gmra.mxu1 %vm827_vm2, %v935_v26  ;;  %v1164_v30 = vsel %vm827_vm2, %v1159_v28, 0 }
 0x1c7   : > { %1864 = vmatpush3.bf16.xpose.msra.mxu1 %v1054_v27  ;;  %1865 = vmatprep.mubr.msk.bf16.mxu1 %vm2333_vm0, %v2332_v0 }
 0x1c8   : > { %1875 = vmatprep.subr.bf16.mxu1 %v2332_v0 }
 0x1ce   : > { %1866 = vmatmul.mubr.msk.bf16.vlgmr.msra.gmra.mxu1 %vm827_vm2, %v1047_v29 }
 0x1cf   : > { %1876 = vmatpush3.bf16.xpose.msra.mxu1 %v1164_v30  ;;  %1877 = vmatprep.mubr.msk.bf16.mxu1 %vm2333_vm0, %v2332_v0 }
 0x1d0   : > { %1887 = vmatprep.subr.bf16.mxu1 %v2332_v0 }
 0x1d6   : > { %1878 = vmatmul.mubr.msk.bf16.vlgmr.msra.gmra.mxu1 %vm827_vm2, %v1157_v31 }
 0x1d7   : > { %1891 = vmatprep.mubr.msk.bf16.mxu1 %vm2333_vm0, %v2332_v0 }
 0x214   : > { %v868_v38 = vpop.f32.mrf.mxu1 }
 0x215   : > { %v869_v39 = vadd.f32 %v868_v38, %v825_v37 }
 0x216   : > { %v1843_v40 = vpop.f32.mrf.mxu1 }
 0x217   : > { %v874_v41 = vsel %vm827_vm2, %v869_v39, -inf }
 0x218   : > { %875 = vmax.xlane.f32.xlu0 %v874_v41  ;;  %v871_v42 = vpop.f32.mrf.mxu1 }
 0x21a   : > { %v1844_v43 = vpop.f32.mrf.mxu1 }
 0x286   : > { %v979_v50 = vpop.f32.mrf.mxu1 }
 0x287   : > { %v980_v51 = vadd.f32 %v979_v50, %v825_v37 }
 0x288   : > { %v1855_v52 = vpop.f32.mrf.mxu1 }
 0x289   : > { %v985_v53 = vsel %vm827_vm2, %v980_v51, -inf  ;;  %v2044_v52 = vld [vmem:[#allocation8 + $0x8] sm:$0xff]  }
 0x28a   : > { %986 = vmax.xlane.f32.xlu1 %v985_v53  ;;  %v982_v54 = vpop.f32.mrf.mxu1  ;;  %1888 = vmatpush3.bf16.msra.mxu1 %v2044_v52 }
 0x28b   : > { %1889 = vmatprep.subr.bf16.mxu1 %v2332_v0 }
 0x28c   : > { %v1856_v55 = vpop.f32.mrf.mxu1 }
 0x28d   : > { %v2045_v55 = vld [vmem:[#allocation8] sm:$0xff]  }
 0x28e   : > { %v1090_v56 = vpop.f32.mrf.mxu1  ;;  %1890 = vmatpush3.bf16.msra.mxu1 %v2045_v55 }
 0x28f   : > { %v1091_v57 = vadd.f32 %v1090_v56, %v825_v37  ;;  %1903 = vmatprep.subr.bf16.mxu1 %v2332_v0 }
 0x290   : > { %v1867_v58 = vpop.f32.mrf.mxu1 }
 0x291   : > { %v1096_v59 = vsel %vm827_vm2, %v1091_v57, -inf }
 0x292   : > { %1097 = vmax.xlane.f32.xlu0 %v1096_v59  ;;  %v1093_v60 = vpop.f32.mrf.mxu1 }
 0x294   : > { %v1868_v61 = vpop.f32.mrf.mxu1 }
 0x296   : > { %v1200_v62 = vpop.f32.mrf.mxu1 }
 0x297   : > { %v1201_v63 = vadd.f32 %v1200_v62, %v825_v37 }
 0x298   : > { %v1879_v1 = vpop.f32.mrf.mxu1 }
 0x299   : > { %v1206_v2 = vsel %vm827_vm2, %v1201_v63, -inf }
 0x29a   : > { %1207 = vmax.xlane.f32.xlu0 %v1206_v2  ;;  %v1203_v3 = vpop.f32.mrf.mxu1 }
 0x29c   : > { %v1880_v4 = vpop.f32.mrf.mxu1 }
 0x2a1   : > { %v876_v6 = vpop.xlane.xlu0 %875 }
 0x2a2   : > { %v877_v7 = vsub.f32 %v869_v39, %v876_v6 }
 0x2a4   : > { %v878_v8 = vmul.f32 1.442695, %v877_v7 }
 0x2a6   : > { %2052 = vpow2.f32 %v878_v8 }
 0x2b3   : > { %v2053_v9 = vpop.eup %2052 }
 0x2b4   : > { %v880_v10 = vsel %vm827_vm2, %v2053_v9, 0.0 }
 0x2b5   : > { %881 = vadd.xlane.f32.xlu1 %v880_v10 }
 0x2c6   : > { %998 = vrot.lane.b32.xlu1 %v820_v45, %s2335_s7  ;;  %s1776_s7 = sshll.u32 %s2314_s21, 7 }
 0x2c7   : > { %s1569_s28 = scalar_lea.hbm %s2829_s25, %s1776_s7 }
 0x313   : > { %v987_v11 = vpop.xlane.xlu1 %986 }
 0x314   : > { %v988_v12 = vsub.f32 %v980_v51, %v987_v11 }
 0x316   : > { %v989_v13 = vmul.f32 1.442695, %v988_v12 }
 0x318   : > { %2054 = vpow2.f32 %v989_v13 }
 0x31b   : > { %v1098_v14 = vpop.xlane.xlu0 %1097 }
 0x31c   : > { %v1099_v15 = vsub.f32 %v1091_v57, %v1098_v14 }
 0x31e   : > { %v1100_v16 = vmul.f32 1.442695, %v1099_v15 }
 0x320   : > { %2056 = vpow2.f32 %v1100_v16 }
 0x323   : > { %v1208_v17 = vpop.xlane.xlu0 %1207 }
 0x324   : > { %v1209_v18 = vsub.f32 %v1201_v63, %v1208_v17 }
 0x325   : > { %v2055_v19 = vpop.eup %2054 }
 0x326   : > { %v1210_v20 = vmul.f32 1.442695, %v1209_v18  ;;  %v991_v21 = vsel %vm827_vm2, %v2055_v19, 0.0 }
 0x327   : > { %992 = vadd.xlane.f32.xlu0 %v991_v21 }
 0x328   : > { %2058 = vpow2.f32 %v1210_v20 }
 0x32d   : > { %v2057_v22 = vpop.eup %2056 }
 0x32e   : > { %v1102_v23 = vsel %vm827_vm2, %v2057_v22, 0.0 }
 0x32f   : > { %1103 = vadd.xlane.f32.xlu1 %v1102_v23  ;;  %v2048_v23 = vld [vmem:[%s2785_s11 + $0x18] sm:$0xff]  }
 0x335   : > { %v2059_v24 = vpop.eup %2058 }
 0x336   : > { %v1212_v25 = vsel %vm827_vm2, %v2059_v24, 0.0 }
 0x337   : > { %1213 = vadd.xlane.f32.xlu0 %v1212_v25 }
 0x33e   : > { %v882_v26 = vpop.xlane.xlu1 %881 }
 0x33f   : > { %2060 = vrcp.f32 %v882_v26 }
 0x340   : > { %1218 = vrot.lane.b32.xlu1 %v820_v45, %s2336_s5  ;;  %s623_s5 = scalar_lea.vmem [#allocation13], %s1738_s17 }
 0x342   : > { %v999_v28 = vpop.permute.xlu1 %998 }
 0x343   : > { %v1004_v31 = vsel %vm889_vm3, %v999_v28, 0 }
 0x34c   : > { %v2061_v27 = vpop.eup %2060 }
 0x34d   : > { %1108 = vrot.lane.b32.xlu0 %v820_v45, %s2334_s14  ;;  %v884_v29 = vmul.f32 %v2061_v27, %v2053_v9  ;;  %s2828_s14 = sld [smem:[#allocation28_spill]] }
 0x34f   : > { %v885_v30 = vpack.c.bf16 %v884_v29, %v884_v29  ;;  %v1761_v29 = vld [vmem:[#allocation10] ss:$0 sm:$0xff] }
 0x351   : > { %1848 = vmatmul.mubr.msk.bf16.vlgmr.msra.gmra.mxu0 %vm827_vm2, %v885_v30 }
 0x352   : > { %1858 = vmatpush3.bf16.msra.mxu0 %v1004_v31  ;;  %1859 = vmatprep.mubr.msk.bf16.mxu0 %vm2333_vm0, %v2332_v0  ;;  %v1762_v31 = vld [vmem:[#allocation11] ss:$0 sm:$0xff] }
 0x353   : > { %1869 = vmatprep.subr.bf16.mxu0 %v2332_v0 }
 0x3b0   : > { %v993_v32 = vpop.xlane.xlu0 %992 }
 0x3b1   : > { %2062 = vrcp.f32 %v993_v32 }
 0x3b8   : > { %v1104_v33 = vpop.xlane.xlu1 %1103 }
 0x3b9   : > { %2064 = vrcp.f32 %v1104_v33 }
 0x3bc   : > { %v1219_v42 = vpop.permute.xlu1 %1218 }
 0x3bd   : > { %v1224_v44 = vsel %vm889_vm3, %v1219_v42, 0 }
 0x3be   : > { %v2063_v34 = vpop.eup %2062 }
 0x3bf   : > { %v995_v35 = vmul.f32 %v2063_v34, %v2055_v19 }
 0x3c0   : > { %v1214_v36 = vpop.xlane.xlu0 %1213 }
 0x3c1   : > { %2066 = vrcp.f32 %v1214_v36  ;;  %v996_v37 = vpack.c.bf16 %v995_v35, %v995_v35  ;;  %v2050_v35 = vld [vmem:[%s2785_s11 + $0x8] sm:$0xff]   ;;  %v2051_v36 = vld [vmem:[%s2785_s11] sm:$0xff]  }
 0x3c3   : > { %1860 = vmatmul.mubr.msk.bf16.vlgmr.msra.gmra.mxu0 %vm827_vm2, %v996_v37 }
 0x3c4   : > { %v1109_v38 = vpop.permute.xlu0 %1108  ;;  %1871 = vmatprep.mubr.msk.bf16.mxu0 %vm2333_vm0, %v2332_v0 }
 0x3c5   : > { %v1114_v39 = vsel %vm889_vm3, %v1109_v38, 0 }
 0x3c6   : > { %v2065_v40 = vpop.eup %2064  ;;  %1870 = vmatpush3.bf16.msra.mxu0 %v1114_v39 }
 0x3c7   : > { %1881 = vmatprep.subr.bf16.mxu0 %v2332_v0  ;;  %v1106_v41 = vmul.f32 %v2065_v40, %v2057_v22  ;;  %v2046_v22 = vld [vmem:[%s2783_s9 + $0x8] sm:$0xff]  }
 0x3c9   : > { %v1107_v43 = vpack.c.bf16 %v1106_v41, %v1106_v41 }
 0x3cb   : > { %1872 = vmatmul.mubr.msk.bf16.vlgmr.msra.gmra.mxu0 %vm827_vm2, %v1107_v43 }
 0x3cc   : > { %1882 = vmatpush3.bf16.msra.mxu0 %v1224_v44  ;;  %1883 = vmatprep.mubr.msk.bf16.mxu0 %vm2333_vm0, %v2332_v0 }
 0x3cd   : > { %1895 = vmatprep.subr.bf16.mxu0 %v2332_v0 }
 0x3ce   : > { %v2067_v45 = vpop.eup %2066 }
 0x3cf   : > { %v1216_v46 = vmul.f32 %v2067_v45, %v2059_v24  ;;  %v2049_v24 = vld [vmem:[%s2785_s11 + $0x10] sm:$0xff]  }
 0x3d1   : > { %v1217_v47 = vpack.c.bf16 %v1216_v46, %v1216_v46 }
 0x3d3   : > { %1884 = vmatmul.mubr.msk.bf16.vlgmr.msra.gmra.mxu0 %vm827_vm2, %v1217_v47 }
 0x3d4   : > { %1899 = vmatprep.mubr.msk.bf16.mxu0 %vm2333_vm0, %v2332_v0  ;;  %1896 = vmatpush3.bf16.msra.mxu0 %v2046_v22 }
 0x3d5   : > { %1897 = vmatprep.subr.bf16.mxu0 %v2332_v0 }
 0x411   : > { %v927_v48 = vpop.f32.mrf.mxu0 }
 0x413   : > { %v1849_v49 = vpop.f32.mrf.mxu0 }
 0x415   : > { %v930_v50 = vpop.f32.mrf.mxu0 }
 0x417   : > { %v1850_v51 = vpop.f32.mrf.mxu0 }
 0x483   : > { %v1040_v53 = vpop.f32.mrf.mxu0 }
 0x484   : > { %1267 = vrot.lane.b32.xlu1 %v1040_v53, %s2337_s8  ;;  %s1571_s8 = sshll.u32 %s623_s5, 4  ;;  %s1572_s8 = int_to_ptr.vmem [resolvable:$true] %s1571_s8 }
 0x485   : > { %v1861_v54 = vpop.f32.mrf.mxu0  ;;  %s2230_s4 = scalar_lea.vmem %s1572_s8, 128 }
 0x486   : > { %p2231_p5 = scmp.ne.s32.totalorder %s1572_s8, %s2230_s4 }
 0x487   : > { %v1043_v56 = vpop.f32.mrf.mxu0 }
 0x488   : > { %p2232_p7 = pnand %p2231_p5, %p2538_p2 }
 0x489   : > { %v1862_v57 = vpop.f32.mrf.mxu0 }
 0x48a   : > { %p2233_p8 = pneg %p2232_p7 }
 0x48b   : > { %v1150_v58 = vpop.f32.mrf.mxu0 }
 0x48c   : > { %1271 = vrot.lane.b32.xlu0 %v1150_v58, %s2338_s26 }
 0x48d   : > { %v1873_v59 = vpop.f32.mrf.mxu0 }
 0x48f   : > { %v1153_v60 = vpop.f32.mrf.mxu0 }
 0x491   : > { %v1874_v61 = vpop.f32.mrf.mxu0 }
 0x492   : > { %v1773_v61 = vld [vmem:[%s2827_s15] ss:$0 sm:$0xff]  ;;  %s2234_s15 = sshll.u32 %s2340_s27, 4  ;;  %s2235_s15 = int_to_ptr.vmem [resolvable:$false] %s2234_s15 }
 0x493   : > { %v1260_v62 = vpop.f32.mrf.mxu0  ;;  %s2236_s21 = scalar_lea.vmem %s2235_s15, 256  ;;  %p2237_p9 = scmp.lt.s32.totalorder %s1572_s8, %s2235_s15 }
 0x494   : > { %1275 = vrot.lane.b32.xlu1 %v1260_v62, %s2339_s10  ;;  %s2825_s10 = sld [smem:[#allocation25_spill]]  ;;  %p2238_p1 = scmp.lt.s32.totalorder %s2236_s21, %s2230_s4 }
 0x495   : > { %v1885_v63 = vpop.f32.mrf.mxu0 }
 0x496   : > { %v1774_v63 = vld [vmem:[%s2828_s14] ss:$0 sm:$0xff]  ;;  %p2239_p10 = por %p2238_p1, %p2237_p9 }
 0x497   : > { %v1263_v1 = vpop.f32.mrf.mxu0 }
 0x498   : > { %p2240_p12 = pnand %p2239_p10, %p2233_p8 }
 0x499   : > { %v1886_v2 = vpop.f32.mrf.mxu0 }
 0x49a   : > { %v1763_v37 = vld [vmem:[%s2825_s10] ss:$0 sm:$0xff] }
 0x4f6   : > { %v1268_v3 = vpop.permute.xlu1 %1267 }
 0x4f7   : > { %v1278_v6 = vsel %vm827_vm2, %v927_v48, %v1268_v3 }
 0x4fe   : > { %v1272_v4 = vpop.permute.xlu0 %1271 }
 0x4ff   : > { %v1280_v7 = vsel %vm1279_vm4, %v1278_v6, %v1272_v4 }
 0x506   : > { %v1276_v8 = vpop.permute.xlu1 %1275 }
 0x507   : > { %v1282_v9 = vsel %vm1281_vm5, %v1280_v7, %v1276_v8 }
 0x508   : > { %v1283_v10 = vpack.c.bf16 %v1282_v9, %v1282_v9 }
 0x50a   : > { %1892 = vmatmul.mubr.msk.bf16.vlgmr.msra.gmra.mxu1 %vm658_vm1, %v1283_v10 }
 0x50b   : > { %1911 = vmatprep.mubr.msk.bf16.mxu1 %vm2333_vm0, %v2332_v0  ;;  %1904 = vmatpush3.bf16.msra.mxu1 %v2048_v23 }
 0x50c   : > { %1905 = vmatprep.subr.bf16.mxu1 %v2332_v0 }
 0x50f   : > { %1906 = vmatpush3.bf16.msra.mxu1 %v2049_v24 }
 0x510   : > { %1907 = vmatprep.subr.bf16.mxu1 %v2332_v0 }
 0x513   : > { %1908 = vmatpush3.bf16.msra.mxu1 %v2050_v35 }
 0x514   : > { %1909 = vmatprep.subr.bf16.mxu1 %v2332_v0  ;;  %v1767_v0 = vld [vmem:[%s2826_s16] ss:$0 sm:$0xff]  ;;  %s1557_s16 = scalar_lea.sflag [#allocation4], %s2568_s6 }
 0x517   : > { %1910 = vmatpush3.bf16.msra.mxu1 %v2051_v36 }
 0x5ca   : > { %v1337_v11 = vpop.f32.mrf.mxu1 }
 0x5cb   : > { %v1338_v12 = vadd.f32 %v1337_v11, %v2610_v5  ;;  %v2047_v5 = vld [vmem:[%s2783_s9] sm:$0xff]  }
 0x5cc   : > { %v1893_v13 = vpop.f32.mrf.mxu1  ;;  %1898 = vmatpush3.bf16.msra.mxu0 %v2047_v5 }
 0x5cd   : > { %v1345_v14 = vsel %vm658_vm1, %v1338_v12, 0.0 }
 0x5ce   : > { %1346 = vadd.xlane.f32.xlu0 %v1345_v14  ;;  %v1340_v15 = vpop.f32.mrf.mxu1 }
 0x5d0   : > { %v1894_v16 = vpop.f32.mrf.mxu1 }
 0x657   : > { %v1347_v17 = vpop.xlane.xlu0 %1346 }
 0x658   : > { %v1349_v18 = vmul.f32 0.03125, %v1347_v17 }
 0x65a   : > { %v1350_v19 = vsub.f32 %v1338_v12, %v1349_v18 }
 0x65c   : > { %v1351_v20 = vmul.f32 %v1350_v19, %v1350_v19 }
 0x65e   : > { %v1352_v21 = vsel %vm658_vm1, %v1351_v20, 0.0 }
 0x65f   : > { %1353 = vadd.xlane.f32.xlu1 %v1352_v21 }
 0x6e8   : > { %v1354_v25 = vpop.xlane.xlu1 %1353 }
 0x6e9   : > { %v1355_v26 = vmul.f32 0.03125, %v1354_v25 }
 0x6eb   : > { %v1356_v27 = vadd.f32 1e-05, %v1355_v26 }
 0x6ed   : > { %2068 = vrsqrt.f32 %v1356_v27 }
 0x6fa   : > { %v2069_v28 = vpop.eup %2068 }
 0x6fb   : > { %v1358_v30 = vmul.f32 %v2069_v28, %v1350_v19 }
 0x6fd   : > { %v1365_v32 = vmul.f32 %v1761_v29, %v1358_v30 }
 0x6ff   : > { %v1372_v33 = vadd.f32 %v1762_v31, %v1365_v32 }
 0x701   : > { %v1373_v34 = vpack.c.bf16 %v1372_v33, %v1372_v33 }
 0x703   : > { %1900 = vmatmul.mubr.msk.bf16.vlgmr.msra.gmra.mxu0 %vm658_vm1, %v1373_v34 }
 0x7c3   : > { %v1434_v38 = vpop.f32.mrf.mxu0 }
 0x7c4   : > { %v1435_v39 = vadd.f32 %v1763_v37, %v1434_v38 }
 0x7c5   : > { %v1901_v40 = vpop.f32.mrf.mxu0 }
 0x7c6   : > { %v1440_v41 = vmax.f32 %v1435_v39, 0.0 }
 0x7c7   : > { %v1437_v42 = vpop.f32.mrf.mxu0 }
 0x7c8   : > { %v1441_v43 = vpack.c.bf16 %v1440_v41, %v1440_v41 }
 0x7c9   : > { %v1902_v44 = vpop.f32.mrf.mxu0 }
 0x7ca   : > { %1912 = vmatmul.mubr.msk.bf16.vlgmr.msra.gmra.mxu1 %vm1481_vm6, %v1441_v43 }
 0x88a   : > { %v1519_v45 = vpop.f32.mrf.mxu1 }
 0x88b   : > { %v1520_v46 = vadd.f32 %v1767_v0, %v1519_v45 }
 0x88c   : > { %v1913_v47 = vpop.f32.mrf.mxu1 }
 0x88d   : > { %v1525_v48 = vadd.f32 %v1520_v46, %v1372_v33 }
 0x88e   : > { %v1522_v49 = vpop.f32.mrf.mxu1 }
 0x88f   : > { %v1528_v50 = vsel %vm658_vm1, %v1525_v48, 0.0 }
 0x890   : > { %1529 = vadd.xlane.f32.xlu0 %v1528_v50  ;;  %v1914_v51 = vpop.f32.mrf.mxu1 }
 0x919   : > { %v1530_v52 = vpop.xlane.xlu0 %1529 }
 0x91a   : > { %v1531_v53 = vmul.f32 0.03125, %v1530_v52 }
 0x91c   : > { %v1532_v54 = vsub.f32 %v1525_v48, %v1531_v53 }
 0x91e   : > { %v1533_v55 = vmul.f32 %v1532_v54, %v1532_v54 }
 0x920   : > { %v1534_v56 = vsel %vm658_vm1, %v1533_v55, 0.0 }
 0x921   : > { %1535 = vadd.xlane.f32.xlu0 %v1534_v56 }
 0x9aa   : > { %v1536_v57 = vpop.xlane.xlu0 %1535 }
 0x9ab   : > { %v1537_v58 = vmul.f32 0.03125, %v1536_v57 }
 0x9ad   : > { %v1538_v59 = vadd.f32 1e-05, %v1537_v58 }
 0x9af   : > { %2070 = vrsqrt.f32 %v1538_v59 }
 0x9bc   : > { %v2071_v60 = vpop.eup %2070 }
 0x9bd   : > { %v1540_v62 = vmul.f32 %v2071_v60, %v1532_v54 }
 0x9bf   : > { %v1547_v1 = vmul.f32 %v1773_v61, %v1540_v62 }
 0x9c1   : > { %v1554_v2 = vadd.f32 %v1774_v63, %v1547_v1 }
 0x9c3   : > { %1555 = vst.msk [vmem:[%s623_s5] sm:$0xff] %vm658_vm1, %v1554_v2 }
 0x9c4   : > { %2243 = shalt.err (!%p2240_p12)
}
 0x9c5   : > { %s2244_s17 = scalar_lea.hbm %s1569_s28, 128  ;;  %s2248_s13 = scalar_lea.hbm %s2829_s25, 256 }
 0x9c6   : > { %p2245_p13 = scmp.ne.s32.totalorder %s1569_s28, %s2244_s17  ;;  %p2249_p4 = scmp.lt.s32.totalorder %s1569_s28, %s2829_s25 }
 0x9c7   : > { %p2250_p6 = scmp.lt.s32.totalorder %s2248_s13, %s2244_s17 }
 0x9c8   : > { %p2246_p0 = pnand %p2245_p13, %p2538_p2 }
 0x9c9   : > { %p2251_p5 = por %p2250_p6, %p2249_p4 }
 0x9ca   : > { %p2247_p11 = pneg %p2246_p0 }
 0x9cc   : > { %p2252_p7 = pnand %p2251_p5, %p2247_p11 }
 0x9ce   : > { %2255 = shalt.err (!%p2252_p7)
}
 0x9cf   : > { %1937 = dma.vmem_to_hbm [thread:$0]  (%p2538_p2), %s1572_s8, 128, %s1569_s28, %s1557_s16  }
 0x9d0 PF: > { %s1583_s5 = sand.u32 1, %s2302_s18   ;;  %p2830_p8 = scmp.ge.s32.totalorder %s2322_s23, 2 }
 0x9d1   : > { %s1584_s26 = scalar_lea.sflag [#allocation4], %s1583_s5 }
 0x9d2   : > { %p1960_p9 = pnand %p2830_p8, %p2546_p3 }
 0x9d4   : > { %p1961_p1 = pneg %p1960_p9 }
 0x9d6   : > { %2297 = dma.done.wait (%p1961_p1), %s1584_s26, 128  }
 0x9d7   : > { %2299 = vsyncadd (%p1961_p1), %s1584_s26, 4294967168  ;;  %s34_s23 = sadd.s32 1, %s2322_s23   ;;  %s2831_s12 = sld [smem:[#allocation19_spill]] }
 0x9d8   : > { %p31_p10 = scmp.ge.s32.totalorder %s34_s23, 4   ;;  %s2832_s18 = smov %s2306_s19 }
 0x9d9   : > { %s2833_s19 = smov %s2310_s20  ;;  %s2834_s20 = smov %s2544_s24 }
 0x9da   : > { %s2835_s21 = smov %s2318_s22  ;;  %33 = sbr.rel (!%p31_p10) target bundleno = 20 (0x14), region = 151 }
 0x9dd   : > { %s2836_s22 = smov %s2831_s12 }
 0x9df   :  { %1589 = vsyncpa [#allocation3], 1 }
 0x9e0   :  { %1591 = vsyncpa [#allocation3 + $0x1], 1 }
 0x9e1   :  { %1592 = vsyncpa [#allocation6], 1 }
 0x9e2   :  { %1593 = vsyncpa [#allocation9], 1 }
 0x9e3   :  { %1594 = vsyncpa [#allocation12], 1 }
 0x9e4   :  { %1595 = vsyncpa [#allocation4], 1 }
 0x9e5   :  { %1597 = vsyncpa [#allocation4 + $0x1], 1 }

// kernel: tpu_custom_call.1
= control target key start
LH: loop header
LB: loop body
LE: loop exit
PB: predicated region body
PF: predicated region fallthrough
CT: control target
= control target key end

     0   :  { %s2774_s0 = inlined_call_operand.vmem [shape: f32[2,8,32], index: 0, kind: input, shape index: {}]   ;;  %s2775_s1 = inlined_call_operand.vmem [shape: f32[2,8,32], index: 1, kind: input, shape index: {}]   ;;  %s2776_s2 = inlined_call_operand.hbm [shape: f32[2,1,8], index: 2, kind: input, shape index: {}]   ;;  %s2777_s3 = inlined_call_operand.vmem [shape: bf16[32,32], index: 3, kind: input, shape index: {}]   ;;  %s2778_s4 = inlined_call_operand.hbm [shape: bf16[32,32], index: 4, kind: input, shape index: {}]   ;;  %s2779_s5 = inlined_call_operand.hbm [shape: bf16[32,32], index: 5, kind: input, shape index: {}]   ;;  %s2780_s6 = inlined_call_operand.hbm [shape: bf16[32,32], index: 6, kind: input, shape index: {}]   ;;  %s2781_s7 = inlined_call_operand.hbm [shape: f32[1,32], index: 7, kind: input, shape index: {}]   ;;  %s2782_s8 = inlined_call_operand.hbm [shape: f32[1,32], index: 8, kind: input, shape index: {}]   ;;  %s2783_s9 = inlined_call_operand.vmem [shape: bf16[32,64], index: 9, kind: input, shape index: {}]   ;;  %s2784_s10 = inlined_call_operand.vmem [shape: f32[1,64], index: 10, kind: input, shape index: {}]   ;;  %s2785_s11 = inlined_call_operand.vmem [shape: bf16[64,32], index: 11, kind: input, shape index: {}]   ;;  %s2786_s12 = inlined_call_operand.vmem [shape: f32[1,32], index: 12, kind: input, shape index: {}]   ;;  %s2787_s13 = inlined_call_operand.vmem [shape: f32[1,32], index: 13, kind: input, shape index: {}]   ;;  %s2788_s14 = inlined_call_operand.vmem [shape: f32[1,32], index: 14, kind: input, shape index: {}]   ;;  %s2789_s15 = inlined_call_operand.hbm [shape: f32[2,8,32], index: 15, kind: output, shape index: {}]  }
   0x1   :  { %2796 = sst [smem:[#allocation20_spill]] %s2778_s4 }
   0x2   :  { %2797 = sst [smem:[#allocation21_spill]] %s2779_s5 }
   0x3   :  { %2798 = sst [smem:[#allocation22_spill]] %s2780_s6 }
   0x4   :  { %2799 = sst [smem:[#allocation23_spill]] %s2781_s7 }
   0x5   :  { %2800 = sst [smem:[#allocation24_spill]] %s2782_s8 }
   0x6   :  { %2801 = sst [smem:[#allocation25_spill]] %s2784_s10 }
   0x7   :  { %2802 = sst [smem:[#allocation26_spill]] %s2786_s12 }
   0x8   :  { %2803 = sst [smem:[#allocation27_spill]] %s2787_s13 }
   0x9   :  { %2804 = sst [smem:[#allocation28_spill]] %s2788_s14 }
   0xa   :  { %2805 = sst [smem:[#allocation29_spill]] %s2789_s15 }
   0xb   :  { %20 = vsyncpa [#allocation3], 0 }
   0xc   :  { %22 = vsyncpa [#allocation3 + $0x1], 0 }
   0xd   :  { %23 = vsyncpa [#allocation6], 0 }
   0xe   :  { %24 = vsyncpa [#allocation9], 0 }
   0xf   :  { %25 = vsyncpa [#allocation12], 0 }
  0x10   :  { %26 = vsyncpa [#allocation4], 0 }
  0x11   :  { %28 = vsyncpa [#allocation4 + $0x1], 0  ;;  %s2421_s18 = smov 0   ;;  %s2423_s19 = smov 0  }
  0x12   :  { %s2425_s20 = smov 0   ;;  %s2427_s21 = smov 0  }
  0x13   :  { %s2429_s22 = smov 0   ;;  %s2431_s23 = smov 0  }
  0x14 LB: > { %s2790_s24 = sadd.s32 4294967295, %s2322_s23   ;;  %p1724_p0 = scmp.ge.s32.totalorder %s2322_s23, 1  ;;  %s2322_s23 = sphi %s2431_s23, %s34_s23   ;;  %s2318_s22 = sphi %s2429_s22, %s2836_s22   ;;  %s2314_s21 = sphi %s2427_s21, %s2835_s21   ;;  %s2310_s20 = sphi %s2425_s20, %s2834_s20   ;;  %s2306_s19 = sphi %s2423_s19, %s2833_s19   ;;  %s2302_s18 = sphi %s2421_s18, %s2832_s18  }
  0x15   : > { %p2455_p1 = scmp.eq.s32.totalorder %s2790_s24, 0  ;;  %p411_p2 = scmp.lt.s32.totalorder %s2322_s23, 3 }
  0x16   : > { %s2324_s27 = smov [#allocation5]   ;;  %s2325_s30 = smov [#allocation8]  }
  0x17   : > { %s2806_s25 = scalar_select %p2455_p1, 1, 0 }
  0x18   : > { %p2460_p3 = pnand %p1724_p0, %p411_p2  ;;  %s426_s28 = sshll.u32 %s2324_s27, 4  ;;  %s427_s28 = int_to_ptr.vmem [resolvable:$true] %s426_s28 }
  0x19   : > { %s452_s16 = sshll.u32 %s2325_s30, 4  ;;  %s2326_s17 = smov [#allocation7]   ;;  %s453_s16 = int_to_ptr.vmem [resolvable:$true] %s452_s16 }
  0x1a   : > { %s2807_s26 = scalar_select %p2460_p3, 1, 0 }
  0x1b   : > { %p1939_p4 = pneg %p2460_p3  ;;  %s439_s24 = sshll.u32 %s2326_s17, 4  ;;  %s440_s24 = int_to_ptr.vmem [resolvable:$true] %s439_s24 }
  0x1c   : > { %s2083_s27 = scalar_lea.vmem %s427_s28, 256  ;;  %p2091_p11 = scmp.lt.s32.totalorder %s427_s28, %s427_s28 }
  0x1d   : > { %p2469_p6 = pnand %p1939_p4, %p2455_p1  ;;  %p2084_p8 = scmp.ne.s32.totalorder %s427_s28, %s2083_s27 }
  0x1e   : > { %p2092_p12 = scmp.lt.s32.totalorder %s2083_s27, %s2083_s27 }
  0x1f   : > { %p2475_p7 = pneg %p2469_p6 }
  0x20   : > { %p2093_p13 = por %p2092_p12, %p2091_p11 }
  0x21   : > { %p2086_p9 = pnand %p2084_p8, %p2475_p7 }
  0x23   : > { %p2087_p10 = pneg %p2086_p9 }
  0x25   : > { %p2094_p0 = pnand %p2093_p13, %p2087_p10 }
  0x27   : > { %2097 = shalt.err (!%p2094_p0)
}
  0x28   : > { %s2327_s30 = smov 64   ;;  %s2328_s17 = smov 4  }
  0x29   : > { %s2810_s4 = sld [smem:[#allocation20_spill]]  ;;  %s2109_s12 = scalar_lea.vmem %s453_s16, 256 }
  0x2a   : > { %p2110_p2 = scmp.ne.s32.totalorder %s453_s16, %s2109_s12  ;;  %p2117_p9 = scmp.lt.s32.totalorder %s453_s16, %s453_s16 }
  0x2b   : > { %p2118_p5 = scmp.lt.s32.totalorder %s2109_s12, %s2109_s12 }
  0x2c   : > { %p2112_p4 = pnand %p2110_p2, %p2475_p7 }
  0x2d   : > { %p2119_p3 = por %p2118_p5, %p2117_p9 }
  0x2e   : > { %p2113_p8 = pneg %p2112_p4 }
  0x2f   : > { %1942 = dma.hbm_to_vmem [thread:$0]  (!%p2469_p6), %s2810_s4, 256, %s427_s28, [#allocation6], %s2327_s30, %s2327_s30, %s2328_s17  }
  0x30   : > { %p2120_p11 = pnand %p2119_p3, %p2113_p8 }
  0x32   : > { %2123 = shalt.err (!%p2120_p11)
}
  0x33   : > { %s2811_s6 = sld [smem:[#allocation22_spill]]  ;;  %s2135_s13 = scalar_lea.vmem %s440_s24, 256 }
  0x34   : > { %p2136_p10 = scmp.ne.s32.totalorder %s440_s24, %s2135_s13  ;;  %p2143_p0 = scmp.lt.s32.totalorder %s440_s24, %s440_s24 }
  0x35   : > { %p2144_p2 = scmp.lt.s32.totalorder %s2135_s13, %s2135_s13 }
  0x36   : > { %p2138_p12 = pnand %p2136_p10, %p2475_p7 }
  0x37   : > { %p2145_p4 = por %p2144_p2, %p2143_p0 }
  0x38   : > { %p2139_p13 = pneg %p2138_p12 }
  0x39   : > { %1948 = dma.hbm_to_vmem [thread:$0]  (!%p2469_p6), %s2811_s6, 256, %s453_s16, [#allocation9], %s2327_s30, %s2327_s30, %s2328_s17  }
  0x3a   : > { %p2146_p1 = pnand %p2145_p4, %p2139_p13 }
  0x3c   : > { %2149 = shalt.err (!%p2146_p1)
}
  0x3d   : > { %s2812_s5 = sld [smem:[#allocation21_spill]]  ;;  %s2329_s10 = smov [#allocation10]  }
  0x3e   : > { %s466_s28 = sshll.u32 %s2329_s10, 4  ;;  %s2330_s16 = smov [#allocation11]   ;;  %s467_s28 = int_to_ptr.vmem [resolvable:$true] %s466_s28 }
  0x3f   : > { %s477_s27 = sshll.u32 %s2330_s16, 4  ;;  %s2161_s4 = scalar_lea.vmem %s467_s28, 16  ;;  %s478_s27 = int_to_ptr.vmem [resolvable:$true] %s477_s27 }
  0x40   : > { %p2162_p3 = scmp.ne.s32.totalorder %s467_s28, %s2161_s4  ;;  %s2168_s13 = scalar_lea.vmem %s467_s28, 32 }
  0x41   : > { %p2169_p9 = scmp.lt.s32.totalorder %s467_s28, %s467_s28  ;;  %p2170_p1 = scmp.lt.s32.totalorder %s2168_s13, %s2161_s4 }
  0x42   : > { %p2164_p5 = pnand %p2162_p3, %p2475_p7 }
  0x43   : > { %1945 = dma.hbm_to_vmem [thread:$0]  (!%p2469_p6), %s2812_s5, 256, %s440_s24, [#allocation6], %s2327_s30, %s2327_s30, %s2328_s17  }
  0x44   : > { %p2165_p8 = pneg %p2164_p5  ;;  %p2171_p11 = por %p2170_p1, %p2169_p9 }
  0x46   : > { %p2172_p10 = pnand %p2171_p11, %p2165_p8 }
  0x48   : > { %2175 = shalt.err (!%p2172_p10)
}
  0x49   : > { %s2813_s7 = sld [smem:[#allocation23_spill]]  ;;  %s2187_s30 = scalar_lea.vmem %s478_s27, 16 }
  0x4a   : > { %p2188_p12 = scmp.ne.s32.totalorder %s478_s27, %s2187_s30  ;;  %s2194_s17 = scalar_lea.vmem %s478_s27, 32 }
  0x4b   : > { %p2195_p2 = scmp.lt.s32.totalorder %s478_s27, %s478_s27  ;;  %p2196_p4 = scmp.lt.s32.totalorder %s2194_s17, %s2187_s30 }
  0x4c   : > { %p2190_p13 = pnand %p2188_p12, %p2475_p7 }
  0x4d   : > { %p2197_p3 = por %p2196_p4, %p2195_p2 }
  0x4e   : > { %p2191_p0 = pneg %p2190_p13 }
  0x4f   : > { %1951 = dma.hbm_to_vmem [thread:$0]  (!%p2469_p6), %s2813_s7, 16, %s467_s28, [#allocation9]  }
  0x50   : > { %p2198_p5 = pnand %p2197_p3, %p2191_p0 }
  0x52   : > { %2201 = shalt.err (!%p2198_p5)
}
  0x53   : > { %s2814_s8 = sld [smem:[#allocation24_spill]]  ;;  %s1723_s15 = sadd.s32 4294967294, %s2322_s23  }
  0x54   : > { %s46_s10 = sadd.s32 1, %s2318_s22  ;;  %s107_s29 = sadd.s32 1, %s2310_s20 }
  0x55   : > { %p48_p7 = scmp.ge.s32.totalorder %s46_s10, 2  ;;  %p114_p8 = scmp.ne.s32.totalorder %s2310_s20, %s2306_s19 }
  0x56   : > { %p115_p9 = scmp.eq.s32.totalorder %s2322_s23, 0  ;;  %p120_p1 = scmp.ne.s32.totalorder %s2306_s19, %s2302_s18 }
  0x57   : > { %s2838_s10 = smov (%p48_p7, %s46_s10), 0  ;;  %p2817_p10 = scmp.ne.s32.totalorder %s2806_s25, 0 }
  0x58   : > { %2815 = sst [smem:[#allocation19_spill]] %s2838_s10  ;;  %p2524_p11 = por %p115_p9, %p114_p8 }
  0x59   : > { %1954 = dma.hbm_to_vmem [thread:$0]  (!%p2469_p6), %s2814_s8, 16, %s478_s27, [#allocation12]  }
  0x5a   : > { %p2530_p6 = por %p2817_p10, %p120_p1  ;;  %s104_s27 = ssub.s32 %s2318_s22, %s2838_s10 }
  0x5b   : > { %s2819_s13 = sadd.s32 4294967295, %s2322_s23   ;;  %p105_p13 = scmp.eq.s32.totalorder %s104_s27, 0 }
  0x5c   : > { %p398_p12 = scmp.eq.s32.totalorder %s2819_s13, 1  ;;  %p404_p0 = scmp.eq.s32.totalorder %s1723_s15, 1 }
  0x5d   : > { %p1968_p4 = scmp.lt.s32.totalorder %s2322_s23, 2  ;;  %s523_s17 = sand.u32 1, %s2310_s20  }
  0x5e   : > { %p2538_p2 = por %p398_p12, %p114_p8  ;;  %p2546_p3 = por %p404_p0, %p120_p1 }
  0x5f   : > { %s2544_s24 = scalar_select %p105_p13, %s2310_s20, %s107_s29  }
  0x60   : > { %s1731_s4 = sshll.u32 %s2318_s22, 4  ;;  %s526_s14 = scalar_lea.vmem [#allocation2], %s523_s17 }
  0x61   : > { %s533_s5 = sshll.u32 %s526_s14, 4  ;;  %s531_s27 = scalar_lea.hbm %s2776_s2, %s1731_s4  ;;  %s534_s5 = int_to_ptr.vmem [resolvable:$true] %s533_s5 }
  0x62   : > { %p2557_p5 = pnand %p1968_p4, %p2524_p11  ;;  %s524_s29 = scalar_lea.sflag [#allocation3], %s523_s17 }
  0x63   : > { %s2215_s13 = scalar_lea.vmem %s534_s5, 16  ;;  %s2331_s8 = smov [#allocation2]  }
  0x64   : > { %p2204_p7 = pneg %p2557_p5  ;;  %p2216_p8 = scmp.ne.s32.totalorder %s534_s5, %s2215_s13 }
  0x65   : > { %s2220_s14 = sshll.u32 %s2331_s8, 4  ;;  %s2221_s14 = int_to_ptr.vmem [resolvable:$false] %s2220_s14 }
  0x66   : > { %p2218_p9 = pnand %p2216_p8, %p2204_p7  ;;  %s2222_s10 = scalar_lea.vmem %s2221_s14, 32 }
  0x67   : > { %p2223_p10 = scmp.lt.s32.totalorder %s534_s5, %s2221_s14  ;;  %p2224_p12 = scmp.lt.s32.totalorder %s2222_s10, %s2215_s13 }
  0x68   : > { %p2219_p1 = pneg %p2218_p9 }
  0x69   : > { %p2225_p13 = por %p2224_p12, %p2223_p10 }
  0x6b   : > { %p2226_p0 = pnand %p2225_p13, %p2219_p1 }
  0x6d   : > { %2229 = shalt.err (!%p2226_p0)
}
  0x6e   : > { %1958 = dma.hbm_to_vmem [thread:$0]  (!%p2557_p5), %s531_s27, 16, %s534_s5, %s524_s29  }
  0x6f   : > { %p2823_p11 = scmp.ne.s32.totalorder %s2807_s26, 0 }
  0x70   : > { %s2568_s6 = sand.u32 (!%p2823_p11), 1, %s2306_s19  }
  0x71   : > { %542 = sbr.rel (%p2823_p11) target bundleno = 2512 (0x9d0), region = 80  ;;  %s545_s7 = scalar_lea.sflag (!%p2823_p11), [#allocation3], %s2568_s6 }
  0x72   : > { %s547_s8 = scalar_lea.vmem (!%p2823_p11), [#allocation2], %s2568_s6 }
  0x76   : > { %2281 = dma.done.wait (%p2530_p6), %s545_s7, 16  }
  0x77   : > { %2283 = vsyncadd (%p2530_p6), %s545_s7, 4294967280  ;;  %p2824_p4 = scmp.ne.s32.totalorder %s2806_s25, 0 }
  0x79   : > { %2285 = dma.done.wait (%p2824_p4), [#allocation6], 512  }
  0x7a   : > { %2287 = vsyncadd (%p2824_p4), [#allocation6], 4294966784 }
  0x7b   : > { %2289 = dma.done.wait (%p2824_p4), [#allocation9], 272  }
  0x7c   : > { %2291 = vsyncadd (%p2824_p4), [#allocation9], 4294967024 }
  0x7d   : > { %2293 = dma.done.wait (%p2824_p4), [#allocation12], 16  }
  0x7e   : > { %2295 = vsyncadd (%p2824_p4), [#allocation12], 4294967280  ;;  %p624_p6 = scmp.lt.s32.totalorder %s2314_s21, 1  ;;  %v2332_v0 = vmov 0.0   ;;  %vm2333_vm0 = vmmov 0   ;;  %v2038_v1 = vld [vmem:[%s2777_s3 + $0x8] sm:$0xff]   ;;  %v822_v32 = vlaneseq }
  0x7f   : > { %1815 = vmatprep.subr.bf16.mxu0 %v2332_v0  ;;  %1823 = vmatprep.subr.bf16.mxu1 %v2332_v0  ;;  %v2039_v2 = vld [vmem:[#allocation5 + $0x8] sm:$0xff]   ;;  %v2040_v3 = vld [vmem:[%s2777_s3] sm:$0xff]   ;;  %vm658_vm1 = vcmask 261120   ;;  %vm827_vm2 = vcmask 64512   ;;  %s2334_s14 = smov 112   ;;  %s2335_s7 = smov 120  }
  0x80   : > { %1819 = vmatprep.mubr.msk.bf16.mxu0 %vm2333_vm0, %v2332_v0  ;;  %1827 = vmatprep.mubr.msk.bf16.mxu1 %vm2333_vm0, %v2332_v0  ;;  %s625_s5 = scalar_select %p624_p6, %s2314_s21, 1  ;;  %v2041_v4 = vld [vmem:[#allocation5] sm:$0xff]   ;;  %v2042_v21 = vld [vmem:[#allocation7 + $0x8] sm:$0xff]   ;;  %v2043_v22 = vld [vmem:[#allocation7] sm:$0xff]   ;;  %v823_v33 = vshrl.u32 %v822_v32, 7  ;;  %vm889_vm3 = vcmask 1043456  }
  0x81   : > { %1816 = vmatpush3.bf16.msra.mxu0 %v2038_v1  ;;  %1824 = vmatpush3.bf16.msra.mxu1 %v2039_v2  ;;  %v640_v34 = vld [vmem:[%s547_s8] sm:$0x1]  ;;  %s2337_s8 = smov 8   ;;  %s2339_s10 = smov 24   ;;  %vm1279_vm4 = vcmask 130048   ;;  %vm1281_vm5 = vcmask 195584  }
  0x82   : > { %s1739_s26 = sshll.u32 %s625_s5, 3  ;;  %1817 = vmatprep.subr.bf16.mxu0 %v2332_v0  ;;  %1825 = vmatprep.subr.bf16.mxu1 %v2332_v0  ;;  %s2336_s5 = smov 104   ;;  %v641_v35 = vmul.f32 -1e+09, %v640_v34  ;;  %v824_v36 = vsub.s32 0, %v823_v33  ;;  %vm1481_vm6 = vcmask 523264  }
  0x83   : > { %s630_s17 = scalar_lea.vmem %s2774_s0, %s1739_s26  ;;  %s634_s15 = scalar_lea.vmem %s2775_s1, %s1739_s26 }
  0x84   : > { %v2610_v5 = vld [vmem:[%s630_s17] sm:$0xff]  ;;  %v825_v37 = vrot.slane %v641_v35, %v824_v36  ;;  %s2338_s26 = smov 16   ;;  %s2826_s16 = sld [smem:[#allocation26_spill]] }
  0x85   : > { %v638_v6 = vld [vmem:[%s634_s15] sm:$0xff]  ;;  %v637_v7 = vpack.c.bf16 %v2610_v5, %v2610_v5  ;;  %1818 = vmatpush3.bf16.msra.mxu0 %v2040_v3  ;;  %1826 = vmatpush3.bf16.msra.mxu1 %v2041_v4  ;;  %s1738_s17 = sshll.u32 %s2568_s6, 3  ;;  %s2827_s15 = sld [smem:[#allocation27_spill]] }
  0x86   : > { %v639_v8 = vpack.c.bf16 %v638_v6, %v638_v6  ;;  %1831 = vmatprep.subr.bf16.mxu0 %v2332_v0  ;;  %1839 = vmatprep.subr.bf16.mxu1 %v2332_v0  ;;  %s2829_s25 = sld [smem:[#allocation29_spill]]  ;;  %s2340_s27 = smov [#allocation13]  }
  0x88   : > { %1820 = vmatmul.mubr.msk.bf16.vlgmr.msra.gmra.mxu0 %vm658_vm1, %v637_v7  ;;  %1828 = vmatmul.mubr.msk.bf16.vlgmr.msra.gmra.mxu1 %vm658_vm1, %v639_v8 }
  0x89   : > { %1835 = vmatprep.mubr.msk.bf16.mxu0 %vm2333_vm0, %v2332_v0  ;;  %1841 = vmatprep.mubr.msk.bf16.mxu1 %vm2333_vm0, %v2332_v0 }
  0x8a   : > { %1832 = vmatpush3.bf16.msra.mxu0 %v2042_v21 }
  0x8b   : > { %1833 = vmatprep.subr.bf16.mxu0 %v2332_v0 }
  0x8e   : > { %1834 = vmatpush3.bf16.msra.mxu0 %v2043_v22 }
  0x8f   : > { %1845 = vmatprep.subr.bf16.mxu0 %v2332_v0 }
  0x91   : > { %1836 = vmatmul.mubr.msk.bf16.vlgmr.msra.gmra.mxu0 %vm658_vm1, %v639_v8 }
  0x92   : > { %1847 = vmatprep.mubr.msk.bf16.mxu0 %vm2333_vm0, %v2332_v0 }
 0x148   : > { %v696_v9 = vpop.f32.mrf.mxu0  ;;  %v755_v11 = vpop.f32.mrf.mxu1 }
 0x149   : > { %v817_v10 = vmul.f32 0.35355338, %v696_v9  ;;  %v819_v12 = vpack.c.bf16 %v755_v11, %v755_v11 }
 0x14a   : > { %v1821_v13 = vpop.f32.mrf.mxu0  ;;  %v1829_v14 = vpop.f32.mrf.mxu1 }
 0x14b   : > { %v818_v15 = vpack.c.bf16 %v817_v10, %v817_v10  ;;  %1048 = vrot.lane.b32.xlu1 %v819_v12, %s2334_s14  ;;  %937 = vrot.lane.b32.xlu0 %v819_v12, %s2335_s7  ;;  %v832_v17 = vsel %vm827_vm2, %v819_v12, 0 }
 0x14c   : > { %v699_v16 = vpop.f32.mrf.mxu0  ;;  %v758_v18 = vpop.f32.mrf.mxu1  ;;  %1840 = vmatpush3.bf16.xpose.msra.mxu1 %v832_v17 }
 0x14d   : > { %1851 = vmatprep.subr.bf16.mxu1 %v2332_v0 }
 0x14e   : > { %v1822_v19 = vpop.f32.mrf.mxu0  ;;  %v1830_v20 = vpop.f32.mrf.mxu1 }
 0x14f   : > { %1046 = vrot.lane.b32.xlu1 %v818_v15, %s2334_s14  ;;  %934 = vrot.lane.b32.xlu0 %v818_v15, %s2335_s7 }
 0x151   : > { %v811_v44 = vpop.f32.mrf.mxu0 }
 0x152   : > { %v820_v45 = vpack.c.bf16 %v811_v44, %v811_v44 }
 0x153   : > { %1156 = vrot.lane.b32.xlu1 %v818_v15, %s2336_s5  ;;  %1158 = vrot.lane.b32.xlu0 %v819_v12, %s2336_s5  ;;  %v1837_v46 = vpop.f32.mrf.mxu0 }
 0x154   : > { %1842 = vmatmul.mubr.msk.bf16.vlgmr.msra.gmra.mxu1 %vm827_vm2, %v818_v15  ;;  %v891_v47 = vsel %vm889_vm3, %v820_v45, 0 }
 0x155   : > { %1853 = vmatprep.mubr.msk.bf16.mxu1 %vm2333_vm0, %v2332_v0  ;;  %v814_v48 = vpop.f32.mrf.mxu0  ;;  %1846 = vmatpush3.bf16.msra.mxu0 %v891_v47 }
 0x156   : > { %1857 = vmatprep.subr.bf16.mxu0 %v2332_v0 }
 0x157   : > { %v1838_v49 = vpop.f32.mrf.mxu0 }
 0x1bd   : > { %v938_v23 = vpop.permute.xlu0 %937  ;;  %v1049_v25 = vpop.permute.xlu1 %1048 }
 0x1be   : > { %v943_v24 = vsel %vm827_vm2, %v938_v23, 0  ;;  %v1054_v27 = vsel %vm827_vm2, %v1049_v25, 0 }
 0x1bf   : > { %1852 = vmatpush3.bf16.xpose.msra.mxu1 %v943_v24 }
 0x1c0   : > { %1863 = vmatprep.subr.bf16.mxu1 %v2332_v0 }
 0x1c1   : > { %v935_v26 = vpop.permute.xlu0 %934  ;;  %v1047_v29 = vpop.permute.xlu1 %1046 }
 0x1c5   : > { %v1159_v28 = vpop.permute.xlu0 %1158  ;;  %v1157_v31 = vpop.permute.xlu1 %1156 }
 0x1c6   : > { %1854 = vmatmul.mubr.msk.bf16.vlgmr.msra.gmra.mxu1 %vm827_vm2, %v935_v26  ;;  %v1164_v30 = vsel %vm827_vm2, %v1159_v28, 0 }
 0x1c7   : > { %1864 = vmatpush3.bf16.xpose.msra.mxu1 %v1054_v27  ;;  %1865 = vmatprep.mubr.msk.bf16.mxu1 %vm2333_vm0, %v2332_v0 }
 0x1c8   : > { %1875 = vmatprep.subr.bf16.mxu1 %v2332_v0 }
 0x1ce   : > { %1866 = vmatmul.mubr.msk.bf16.vlgmr.msra.gmra.mxu1 %vm827_vm2, %v1047_v29 }
 0x1cf   : > { %1876 = vmatpush3.bf16.xpose.msra.mxu1 %v1164_v30  ;;  %1877 = vmatprep.mubr.msk.bf16.mxu1 %vm2333_vm0, %v2332_v0 }
 0x1d0   : > { %1887 = vmatprep.subr.bf16.mxu1 %v2332_v0 }
 0x1d6   : > { %1878 = vmatmul.mubr.msk.bf16.vlgmr.msra.gmra.mxu1 %vm827_vm2, %v1157_v31 }
 0x1d7   : > { %1891 = vmatprep.mubr.msk.bf16.mxu1 %vm2333_vm0, %v2332_v0 }
 0x214   : > { %v868_v38 = vpop.f32.mrf.mxu1 }
 0x215   : > { %v869_v39 = vadd.f32 %v868_v38, %v825_v37 }
 0x216   : > { %v1843_v40 = vpop.f32.mrf.mxu1 }
 0x217   : > { %v874_v41 = vsel %vm827_vm2, %v869_v39, -inf }
 0x218   : > { %875 = vmax.xlane.f32.xlu0 %v874_v41  ;;  %v871_v42 = vpop.f32.mrf.mxu1 }
 0x21a   : > { %v1844_v43 = vpop.f32.mrf.mxu1 }
 0x286   : > { %v979_v50 = vpop.f32.mrf.mxu1 }
 0x287   : > { %v980_v51 = vadd.f32 %v979_v50, %v825_v37 }
 0x288   : > { %v1855_v52 = vpop.f32.mrf.mxu1 }
 0x289   : > { %v985_v53 = vsel %vm827_vm2, %v980_v51, -inf  ;;  %v2044_v52 = vld [vmem:[#allocation8 + $0x8] sm:$0xff]  }
 0x28a   : > { %986 = vmax.xlane.f32.xlu1 %v985_v53  ;;  %v982_v54 = vpop.f32.mrf.mxu1  ;;  %1888 = vmatpush3.bf16.msra.mxu1 %v2044_v52 }
 0x28b   : > { %1889 = vmatprep.subr.bf16.mxu1 %v2332_v0 }
 0x28c   : > { %v1856_v55 = vpop.f32.mrf.mxu1 }
 0x28d   : > { %v2045_v55 = vld [vmem:[#allocation8] sm:$0xff]  }
 0x28e   : > { %v1090_v56 = vpop.f32.mrf.mxu1  ;;  %1890 = vmatpush3.bf16.msra.mxu1 %v2045_v55 }
 0x28f   : > { %v1091_v57 = vadd.f32 %v1090_v56, %v825_v37  ;;  %1903 = vmatprep.subr.bf16.mxu1 %v2332_v0 }
 0x290   : > { %v1867_v58 = vpop.f32.mrf.mxu1 }
 0x291   : > { %v1096_v59 = vsel %vm827_vm2, %v1091_v57, -inf }
 0x292   : > { %1097 = vmax.xlane.f32.xlu0 %v1096_v59  ;;  %v1093_v60 = vpop.f32.mrf.mxu1 }
 0x294   : > { %v1868_v61 = vpop.f32.mrf.mxu1 }
 0x296   : > { %v1200_v62 = vpop.f32.mrf.mxu1 }
 0x297   : > { %v1201_v63 = vadd.f32 %v1200_v62, %v825_v37 }
 0x298   : > { %v1879_v1 = vpop.f32.mrf.mxu1 }
 0x299   : > { %v1206_v2 = vsel %vm827_vm2, %v1201_v63, -inf }
 0x29a   : > { %1207 = vmax.xlane.f32.xlu0 %v1206_v2  ;;  %v1203_v3 = vpop.f32.mrf.mxu1 }
 0x29c   : > { %v1880_v4 = vpop.f32.mrf.mxu1 }
 0x2a1   : > { %v876_v6 = vpop.xlane.xlu0 %875 }
 0x2a2   : > { %v877_v7 = vsub.f32 %v869_v39, %v876_v6 }
 0x2a4   : > { %v878_v8 = vmul.f32 1.442695, %v877_v7 }
 0x2a6   : > { %2052 = vpow2.f32 %v878_v8 }
 0x2b3   : > { %v2053_v9 = vpop.eup %2052 }
 0x2b4   : > { %v880_v10 = vsel %vm827_vm2, %v2053_v9, 0.0 }
 0x2b5   : > { %881 = vadd.xlane.f32.xlu1 %v880_v10 }
 0x2c6   : > { %998 = vrot.lane.b32.xlu1 %v820_v45, %s2335_s7  ;;  %s1776_s7 = sshll.u32 %s2314_s21, 7 }
 0x2c7   : > { %s1569_s28 = scalar_lea.hbm %s2829_s25, %s1776_s7 }
 0x313   : > { %v987_v11 = vpop.xlane.xlu1 %986 }
 0x314   : > { %v988_v12 = vsub.f32 %v980_v51, %v987_v11 }
 0x316   : > { %v989_v13 = vmul.f32 1.442695, %v988_v12 }
 0x318   : > { %2054 = vpow2.f32 %v989_v13 }
 0x31b   : > { %v1098_v14 = vpop.xlane.xlu0 %1097 }
 0x31c   : > { %v1099_v15 = vsub.f32 %v1091_v57, %v1098_v14 }
 0x31e   : > { %v1100_v16 = vmul.f32 1.442695, %v1099_v15 }
 0x320   : > { %2056 = vpow2.f32 %v1100_v16 }
 0x323   : > { %v1208_v17 = vpop.xlane.xlu0 %1207 }
 0x324   : > { %v1209_v18 = vsub.f32 %v1201_v63, %v1208_v17 }
 0x325   : > { %v2055_v19 = vpop.eup %2054 }
 0x326   : > { %v1210_v20 = vmul.f32 1.442695, %v1209_v18  ;;  %v991_v21 = vsel %vm827_vm2, %v2055_v19, 0.0 }
 0x327   : > { %992 = vadd.xlane.f32.xlu0 %v991_v21 }
 0x328   : > { %2058 = vpow2.f32 %v1210_v20 }
 0x32d   : > { %v2057_v22 = vpop.eup %2056 }
 0x32e   : > { %v1102_v23 = vsel %vm827_vm2, %v2057_v22, 0.0 }
 0x32f   : > { %1103 = vadd.xlane.f32.xlu1 %v1102_v23  ;;  %v2048_v23 = vld [vmem:[%s2785_s11 + $0x18] sm:$0xff]  }
 0x335   : > { %v2059_v24 = vpop.eup %2058 }
 0x336   : > { %v1212_v25 = vsel %vm827_vm2, %v2059_v24, 0.0 }
 0x337   : > { %1213 = vadd.xlane.f32.xlu0 %v1212_v25 }
 0x33e   : > { %v882_v26 = vpop.xlane.xlu1 %881 }
 0x33f   : > { %2060 = vrcp.f32 %v882_v26 }
 0x340   : > { %1218 = vrot.lane.b32.xlu1 %v820_v45, %s2336_s5  ;;  %s623_s5 = scalar_lea.vmem [#allocation13], %s1738_s17 }
 0x342   : > { %v999_v28 = vpop.permute.xlu1 %998 }
 0x343   : > { %v1004_v31 = vsel %vm889_vm3, %v999_v28, 0 }
 0x34c   : > { %v2061_v27 = vpop.eup %2060 }
 0x34d   : > { %1108 = vrot.lane.b32.xlu0 %v820_v45, %s2334_s14  ;;  %v884_v29 = vmul.f32 %v2061_v27, %v2053_v9  ;;  %s2828_s14 = sld [smem:[#allocation28_spill]] }
 0x34f   : > { %v885_v30 = vpack.c.bf16 %v884_v29, %v884_v29  ;;  %v1761_v29 = vld [vmem:[#allocation10] ss:$0 sm:$0xff] }
 0x351   : > { %1848 = vmatmul.mubr.msk.bf16.vlgmr.msra.gmra.mxu0 %vm827_vm2, %v885_v30 }
 0x352   : > { %1858 = vmatpush3.bf16.msra.mxu0 %v1004_v31  ;;  %1859 = vmatprep.mubr.msk.bf16.mxu0 %vm2333_vm0, %v2332_v0  ;;  %v1762_v31 = vld [vmem:[#allocation11] ss:$0 sm:$0xff] }
 0x353   : > { %1869 = vmatprep.subr.bf16.mxu0 %v2332_v0 }
 0x3b0   : > { %v993_v32 = vpop.xlane.xlu0 %992 }
 0x3b1   : > { %2062 = vrcp.f32 %v993_v32 }
 0x3b8   : > { %v1104_v33 = vpop.xlane.xlu1 %1103 }
 0x3b9   : > { %2064 = vrcp.f32 %v1104_v33 }
 0x3bc   : > { %v1219_v42 = vpop.permute.xlu1 %1218 }
 0x3bd   : > { %v1224_v44 = vsel %vm889_vm3, %v1219_v42, 0 }
 0x3be   : > { %v2063_v34 = vpop.eup %2062 }
 0x3bf   : > { %v995_v35 = vmul.f32 %v2063_v34, %v2055_v19 }
 0x3c0   : > { %v1214_v36 = vpop.xlane.xlu0 %1213 }
 0x3c1   : > { %2066 = vrcp.f32 %v1214_v36  ;;  %v996_v37 = vpack.c.bf16 %v995_v35, %v995_v35  ;;  %v2050_v35 = vld [vmem:[%s2785_s11 + $0x8] sm:$0xff]   ;;  %v2051_v36 = vld [vmem:[%s2785_s11] sm:$0xff]  }
 0x3c3   : > { %1860 = vmatmul.mubr.msk.bf16.vlgmr.msra.gmra.mxu0 %vm827_vm2, %v996_v37 }
 0x3c4   : > { %v1109_v38 = vpop.permute.xlu0 %1108  ;;  %1871 = vmatprep.mubr.msk.bf16.mxu0 %vm2333_vm0, %v2332_v0 }
 0x3c5   : > { %v1114_v39 = vsel %vm889_vm3, %v1109_v38, 0 }
 0x3c6   : > { %v2065_v40 = vpop.eup %2064  ;;  %1870 = vmatpush3.bf16.msra.mxu0 %v1114_v39 }
 0x3c7   : > { %1881 = vmatprep.subr.bf16.mxu0 %v2332_v0  ;;  %v1106_v41 = vmul.f32 %v2065_v40, %v2057_v22  ;;  %v2046_v22 = vld [vmem:[%s2783_s9 + $0x8] sm:$0xff]  }
 0x3c9   : > { %v1107_v43 = vpack.c.bf16 %v1106_v41, %v1106_v41 }
 0x3cb   : > { %1872 = vmatmul.mubr.msk.bf16.vlgmr.msra.gmra.mxu0 %vm827_vm2, %v1107_v43 }
 0x3cc   : > { %1882 = vmatpush3.bf16.msra.mxu0 %v1224_v44  ;;  %1883 = vmatprep.mubr.msk.bf16.mxu0 %vm2333_vm0, %v2332_v0 }
 0x3cd   : > { %1895 = vmatprep.subr.bf16.mxu0 %v2332_v0 }
 0x3ce   : > { %v2067_v45 = vpop.eup %2066 }
 0x3cf   : > { %v1216_v46 = vmul.f32 %v2067_v45, %v2059_v24  ;;  %v2049_v24 = vld [vmem:[%s2785_s11 + $0x10] sm:$0xff]  }
 0x3d1   : > { %v1217_v47 = vpack.c.bf16 %v1216_v46, %v1216_v46 }
 0x3d3   : > { %1884 = vmatmul.mubr.msk.bf16.vlgmr.msra.gmra.mxu0 %vm827_vm2, %v1217_v47 }
 0x3d4   : > { %1899 = vmatprep.mubr.msk.bf16.mxu0 %vm2333_vm0, %v2332_v0  ;;  %1896 = vmatpush3.bf16.msra.mxu0 %v2046_v22 }
 0x3d5   : > { %1897 = vmatprep.subr.bf16.mxu0 %v2332_v0 }
 0x411   : > { %v927_v48 = vpop.f32.mrf.mxu0 }
 0x413   : > { %v1849_v49 = vpop.f32.mrf.mxu0 }
 0x415   : > { %v930_v50 = vpop.f32.mrf.mxu0 }
 0x417   : > { %v1850_v51 = vpop.f32.mrf.mxu0 }
 0x483   : > { %v1040_v53 = vpop.f32.mrf.mxu0 }
 0x484   : > { %1267 = vrot.lane.b32.xlu1 %v1040_v53, %s2337_s8  ;;  %s1571_s8 = sshll.u32 %s623_s5, 4  ;;  %s1572_s8 = int_to_ptr.vmem [resolvable:$true] %s1571_s8 }
 0x485   : > { %v1861_v54 = vpop.f32.mrf.mxu0  ;;  %s2230_s4 = scalar_lea.vmem %s1572_s8, 128 }
 0x486   : > { %p2231_p5 = scmp.ne.s32.totalorder %s1572_s8, %s2230_s4 }
 0x487   : > { %v1043_v56 = vpop.f32.mrf.mxu0 }
 0x488   : > { %p2232_p7 = pnand %p2231_p5, %p2538_p2 }
 0x489   : > { %v1862_v57 = vpop.f32.mrf.mxu0 }
 0x48a   : > { %p2233_p8 = pneg %p2232_p7 }
 0x48b   : > { %v1150_v58 = vpop.f32.mrf.mxu0 }
 0x48c   : > { %1271 = vrot.lane.b32.xlu0 %v1150_v58, %s2338_s26 }
 0x48d   : > { %v1873_v59 = vpop.f32.mrf.mxu0 }
 0x48f   : > { %v1153_v60 = vpop.f32.mrf.mxu0 }
 0x491   : > { %v1874_v61 = vpop.f32.mrf.mxu0 }
 0x492   : > { %v1773_v61 = vld [vmem:[%s2827_s15] ss:$0 sm:$0xff]  ;;  %s2234_s15 = sshll.u32 %s2340_s27, 4  ;;  %s2235_s15 = int_to_ptr.vmem [resolvable:$false] %s2234_s15 }
 0x493   : > { %v1260_v62 = vpop.f32.mrf.mxu0  ;;  %s2236_s21 = scalar_lea.vmem %s2235_s15, 256  ;;  %p2237_p9 = scmp.lt.s32.totalorder %s1572_s8, %s2235_s15 }
 0x494   : > { %1275 = vrot.lane.b32.xlu1 %v1260_v62, %s2339_s10  ;;  %s2825_s10 = sld [smem:[#allocation25_spill]]  ;;  %p2238_p1 = scmp.lt.s32.totalorder %s2236_s21, %s2230_s4 }
 0x495   : > { %v1885_v63 = vpop.f32.mrf.mxu0 }
 0x496   : > { %v1774_v63 = vld [vmem:[%s2828_s14] ss:$0 sm:$0xff]  ;;  %p2239_p10 = por %p2238_p1, %p2237_p9 }
 0x497   : > { %v1263_v1 = vpop.f32.mrf.mxu0 }
 0x498   : > { %p2240_p12 = pnand %p2239_p10, %p2233_p8 }
 0x499   : > { %v1886_v2 = vpop.f32.mrf.mxu0 }
 0x49a   : > { %v1763_v37 = vld [vmem:[%s2825_s10] ss:$0 sm:$0xff] }
 0x4f6   : > { %v1268_v3 = vpop.permute.xlu1 %1267 }
 0x4f7   : > { %v1278_v6 = vsel %vm827_vm2, %v927_v48, %v1268_v3 }
 0x4fe   : > { %v1272_v4 = vpop.permute.xlu0 %1271 }
 0x4ff   : > { %v1280_v7 = vsel %vm1279_vm4, %v1278_v6, %v1272_v4 }
 0x506   : > { %v1276_v8 = vpop.permute.xlu1 %1275 }
 0x507   : > { %v1282_v9 = vsel %vm1281_vm5, %v1280_v7, %v1276_v8 }
 0x508   : > { %v1283_v10 = vpack.c.bf16 %v1282_v9, %v1282_v9 }
 0x50a   : > { %1892 = vmatmul.mubr.msk.bf16.vlgmr.msra.gmra.mxu1 %vm658_vm1, %v1283_v10 }
 0x50b   : > { %1911 = vmatprep.mubr.msk.bf16.mxu1 %vm2333_vm0, %v2332_v0  ;;  %1904 = vmatpush3.bf16.msra.mxu1 %v2048_v23 }
 0x50c   : > { %1905 = vmatprep.subr.bf16.mxu1 %v2332_v0 }
 0x50f   : > { %1906 = vmatpush3.bf16.msra.mxu1 %v2049_v24 }
 0x510   : > { %1907 = vmatprep.subr.bf16.mxu1 %v2332_v0 }
 0x513   : > { %1908 = vmatpush3.bf16.msra.mxu1 %v2050_v35 }
 0x514   : > { %1909 = vmatprep.subr.bf16.mxu1 %v2332_v0  ;;  %v1767_v0 = vld [vmem:[%s2826_s16] ss:$0 sm:$0xff]  ;;  %s1557_s16 = scalar_lea.sflag [#allocation4], %s2568_s6 }
 0x517   : > { %1910 = vmatpush3.bf16.msra.mxu1 %v2051_v36 }
 0x5ca   : > { %v1337_v11 = vpop.f32.mrf.mxu1 }
 0x5cb   : > { %v1338_v12 = vadd.f32 %v1337_v11, %v2610_v5  ;;  %v2047_v5 = vld [vmem:[%s2783_s9] sm:$0xff]  }
 0x5cc   : > { %v1893_v13 = vpop.f32.mrf.mxu1  ;;  %1898 = vmatpush3.bf16.msra.mxu0 %v2047_v5 }
 0x5cd   : > { %v1345_v14 = vsel %vm658_vm1, %v1338_v12, 0.0 }
 0x5ce   : > { %1346 = vadd.xlane.f32.xlu0 %v1345_v14  ;;  %v1340_v15 = vpop.f32.mrf.mxu1 }
 0x5d0   : > { %v1894_v16 = vpop.f32.mrf.mxu1 }
 0x657   : > { %v1347_v17 = vpop.xlane.xlu0 %1346 }
 0x658   : > { %v1349_v18 = vmul.f32 0.03125, %v1347_v17 }
 0x65a   : > { %v1350_v19 = vsub.f32 %v1338_v12, %v1349_v18 }
 0x65c   : > { %v1351_v20 = vmul.f32 %v1350_v19, %v1350_v19 }
 0x65e   : > { %v1352_v21 = vsel %vm658_vm1, %v1351_v20, 0.0 }
 0x65f   : > { %1353 = vadd.xlane.f32.xlu1 %v1352_v21 }
 0x6e8   : > { %v1354_v25 = vpop.xlane.xlu1 %1353 }
 0x6e9   : > { %v1355_v26 = vmul.f32 0.03125, %v1354_v25 }
 0x6eb   : > { %v1356_v27 = vadd.f32 1e-05, %v1355_v26 }
 0x6ed   : > { %2068 = vrsqrt.f32 %v1356_v27 }
 0x6fa   : > { %v2069_v28 = vpop.eup %2068 }
 0x6fb   : > { %v1358_v30 = vmul.f32 %v2069_v28, %v1350_v19 }
 0x6fd   : > { %v1365_v32 = vmul.f32 %v1761_v29, %v1358_v30 }
 0x6ff   : > { %v1372_v33 = vadd.f32 %v1762_v31, %v1365_v32 }
 0x701   : > { %v1373_v34 = vpack.c.bf16 %v1372_v33, %v1372_v33 }
 0x703   : > { %1900 = vmatmul.mubr.msk.bf16.vlgmr.msra.gmra.mxu0 %vm658_vm1, %v1373_v34 }
 0x7c3   : > { %v1434_v38 = vpop.f32.mrf.mxu0 }
 0x7c4   : > { %v1435_v39 = vadd.f32 %v1763_v37, %v1434_v38 }
 0x7c5   : > { %v1901_v40 = vpop.f32.mrf.mxu0 }
 0x7c6   : > { %v1440_v41 = vmax.f32 %v1435_v39, 0.0 }
 0x7c7   : > { %v1437_v42 = vpop.f32.mrf.mxu0 }
 0x7c8   : > { %v1441_v43 = vpack.c.bf16 %v1440_v41, %v1440_v41 }
 0x7c9   : > { %v1902_v44 = vpop.f32.mrf.mxu0 }
 0x7ca   : > { %1912 = vmatmul.mubr.msk.bf16.vlgmr.msra.gmra.mxu1 %vm1481_vm6, %v1441_v43 }
 0x88a   : > { %v1519_v45 = vpop.f32.mrf.mxu1 }
 0x88b   : > { %v1520_v46 = vadd.f32 %v1767_v0, %v1519_v45 }
 0x88c   : > { %v1913_v47 = vpop.f32.mrf.mxu1 }
 0x88d   : > { %v1525_v48 = vadd.f32 %v1520_v46, %v1372_v33 }
 0x88e   : > { %v1522_v49 = vpop.f32.mrf.mxu1 }
 0x88f   : > { %v1528_v50 = vsel %vm658_vm1, %v1525_v48, 0.0 }
 0x890   : > { %1529 = vadd.xlane.f32.xlu0 %v1528_v50  ;;  %v1914_v51 = vpop.f32.mrf.mxu1 }
 0x919   : > { %v1530_v52 = vpop.xlane.xlu0 %1529 }
 0x91a   : > { %v1531_v53 = vmul.f32 0.03125, %v1530_v52 }
 0x91c   : > { %v1532_v54 = vsub.f32 %v1525_v48, %v1531_v53 }
 0x91e   : > { %v1533_v55 = vmul.f32 %v1532_v54, %v1532_v54 }
 0x920   : > { %v1534_v56 = vsel %vm658_vm1, %v1533_v55, 0.0 }
 0x921   : > { %1535 = vadd.xlane.f32.xlu0 %v1534_v56 }
 0x9aa   : > { %v1536_v57 = vpop.xlane.xlu0 %1535 }
 0x9ab   : > { %v1537_v58 = vmul.f32 0.03125, %v1536_v57 }
 0x9ad   : > { %v1538_v59 = vadd.f32 1e-05, %v1537_v58 }
 0x9af   : > { %2070 = vrsqrt.f32 %v1538_v59 }
 0x9bc   : > { %v2071_v60 = vpop.eup %2070 }
 0x9bd   : > { %v1540_v62 = vmul.f32 %v2071_v60, %v1532_v54 }
 0x9bf   : > { %v1547_v1 = vmul.f32 %v1773_v61, %v1540_v62 }
 0x9c1   : > { %v1554_v2 = vadd.f32 %v1774_v63, %v1547_v1 }
 0x9c3   : > { %1555 = vst.msk [vmem:[%s623_s5] sm:$0xff] %vm658_vm1, %v1554_v2 }
 0x9c4   : > { %2243 = shalt.err (!%p2240_p12)
}
 0x9c5   : > { %s2244_s17 = scalar_lea.hbm %s1569_s28, 128  ;;  %s2248_s13 = scalar_lea.hbm %s2829_s25, 256 }
 0x9c6   : > { %p2245_p13 = scmp.ne.s32.totalorder %s1569_s28, %s2244_s17  ;;  %p2249_p4 = scmp.lt.s32.totalorder %s1569_s28, %s2829_s25 }
 0x9c7   : > { %p2250_p6 = scmp.lt.s32.totalorder %s2248_s13, %s2244_s17 }
 0x9c8   : > { %p2246_p0 = pnand %p2245_p13, %p2538_p2 }
 0x9c9   : > { %p2251_p5 = por %p2250_p6, %p2249_p4 }
 0x9ca   : > { %p2247_p11 = pneg %p2246_p0 }
 0x9cc   : > { %p2252_p7 = pnand %p2251_p5, %p2247_p11 }
 0x9ce   : > { %2255 = shalt.err (!%p2252_p7)
}
 0x9cf   : > { %1937 = dma.vmem_to_hbm [thread:$0]  (%p2538_p2), %s1572_s8, 128, %s1569_s28, %s1557_s16  }
 0x9d0 PF: > { %s1583_s5 = sand.u32 1, %s2302_s18   ;;  %p2830_p8 = scmp.ge.s32.totalorder %s2322_s23, 2 }
 0x9d1   : > { %s1584_s26 = scalar_lea.sflag [#allocation4], %s1583_s5 }
 0x9d2   : > { %p1960_p9 = pnand %p2830_p8, %p2546_p3 }
 0x9d4   : > { %p1961_p1 = pneg %p1960_p9 }
 0x9d6   : > { %2297 = dma.done.wait (%p1961_p1), %s1584_s26, 128  }
 0x9d7   : > { %2299 = vsyncadd (%p1961_p1), %s1584_s26, 4294967168  ;;  %s34_s23 = sadd.s32 1, %s2322_s23   ;;  %s2831_s12 = sld [smem:[#allocation19_spill]] }
 0x9d8   : > { %p31_p10 = scmp.ge.s32.totalorder %s34_s23, 4   ;;  %s2832_s18 = smov %s2306_s19 }
 0x9d9   : > { %s2833_s19 = smov %s2310_s20  ;;  %s2834_s20 = smov %s2544_s24 }
 0x9da   : > { %s2835_s21 = smov %s2318_s22  ;;  %33 = sbr.rel (!%p31_p10) target bundleno = 20 (0x14), region = 151 }
 0x9dd   : > { %s2836_s22 = smov %s2831_s12 }
 0x9df   :  { %1589 = vsyncpa [#allocation3], 1 }
 0x9e0   :  { %1591 = vsyncpa [#allocation3 + $0x1], 1 }
 0x9e1   :  { %1592 = vsyncpa [#allocation6], 1 }
 0x9e2   :  { %1593 = vsyncpa [#allocation9], 1 }
 0x9e3   :  { %1594 = vsyncpa [#allocation12], 1 }
 0x9e4   :  { %1595 = vsyncpa [#allocation4], 1 }
 0x9e5   :  { %1597 = vsyncpa [#allocation4 + $0x1], 1 }

</bundles_post_ra>
